<compile_context>
chip_gen: v7x
topology: tpu7x:2x2x1
jax: 0.10.0
libtpu: 0.0.40
codegen_flags: <defaults>
</compile_context>

<pallas_src>
import functools
import math

import jax
import jax.numpy as jnp
from jax.experimental import pallas as pl
from jax.experimental.pallas import tpu as pltpu


def _round_up(x, m):
    return ((x + m - 1) // m) * m


def _vmem_capacity_bytes():
    try:
        info = pltpu.get_tpu_info()
        cap = getattr(info, "vmem_capacity_bytes", None)
        if cap:
            return int(cap)
    except Exception:
        pass
    return 64 * 1024 * 1024  # conservative default (v7x per-TensorCore)


def _vq_kernel(z_ref, es_ref, et_ref, bias_ref,
               zq_ref, idx_ref, psum_ref, mse_ref,
               *, n_codes, tile_hw, hw, ragged):
    j = pl.program_id(1)

    zt = z_ref[0]          # (D, TN)   pixels on lanes
    es = es_ref[...]       # (K, D)    codebook * (2 / temp)    (grid-resident)
    et = et_ref[...]       # (D, K)    codebook^T               (grid-resident)
    bias = bias_ref[...]   # (K, 1)    -||e_k||^2 / temp        (grid-resident)

    # logits[k, n] = (2/temp) * <e_k, z_n> - ||e_k||^2 / temp
    # (per-pixel -||z_n||^2/temp constant dropped: softmax / argmax invariant)
    logits = jnp.dot(es, zt, preferred_element_type=jnp.float32) + bias   # (K, TN)

    m = jnp.max(logits, axis=0, keepdims=True)                            # (1, TN)

    # argmax over codes (first index on ties), all-integer bookkeeping
    code_ids = jax.lax.broadcasted_iota(jnp.int32, (n_codes, 1), 0)       # (K, 1)
    idx = jnp.min(jnp.where(logits == m, code_ids, n_codes),
                  axis=0, keepdims=True)                                  # (1, TN) i32
    idx_ref[0] = idx

    # softmax over codes; exact reciprocal on the small (1, TN) row is cheap
    p = jnp.exp(logits - m)                                               # (K, TN)
    denom = jnp.sum(p, axis=0, keepdims=True)                             # (1, TN)
    soft = p * (1.0 / denom)                                              # (K, TN)

    # quantized output directly in lane-dense (D, TN) layout
    zqt = jnp.dot(et, soft, preferred_element_type=jnp.float32)           # (D, TN)
    zq_ref[0] = zqt.astype(zq_ref.dtype)

    # per-pixel squared-error column sums (D is tiny)
    diff = zqt - zt
    colsq = jnp.sum(diff * diff, axis=0, keepdims=True)                   # (1, TN)

    # on-chip stats accumulators: resident output blocks, HBM writeback once
    # per batch (not once per tile)
    @pl.when(j == 0)
    def _():
        psum_ref[...] = jnp.zeros_like(psum_ref)
        mse_ref[...] = jnp.zeros_like(mse_ref)

    def _acc(code_sum, ssq):
        psum_ref[...] += code_sum      # (K, 1) broadcast over the 128 stat lanes
        mse_ref[...] += ssq            # (1, 1) broadcast over the 128 stat lanes

    if not ragged:
        # fast path: every tile is full, no masking at all
        _acc(jnp.sum(soft, axis=1, keepdims=True),
             jnp.sum(colsq, axis=1, keepdims=True))
    else:
        last = pl.num_programs(1) - 1

        @pl.when(j != last)
        def _():
            _acc(jnp.sum(soft, axis=1, keepdims=True),
                 jnp.sum(colsq, axis=1, keepdims=True))

        @pl.when(j == last)
        def _():
            # mask the ragged tail columns (NaN-safe: where selects 0)
            col = jax.lax.broadcasted_iota(jnp.int32, (1, tile_hw), 1) + j * tile_hw
            valid = col < hw
            _acc(jnp.sum(jnp.where(valid, soft, 0.0), axis=1, keepdims=True),
                 jnp.sum(jnp.where(valid, colsq, 0.0), axis=1, keepdims=True))


def vq_pallas(z3, embedding, temp, *, tile_hw=None):
    """z3: (bt, e_dim, h*w) f32, embedding: (n_e, e_dim) f32.

    Returns:
      zq3        (bt, e_dim, h*w) f32 — soft-quantized z, same layout as input
      indices    (bt, h*w) int32      — argmax code per pixel
      code_sums  (n_e,) f32           — sum of soft_encodings over all pixels
      sum_sq     () f32               — sum over pixels/channels of (z_q - z)^2
    """
    bt, d, hw = z3.shape
    k, d2 = embedding.shape
    assert d == d2
    temp = float(temp)

    phys = _vmem_capacity_bytes()

    if tile_hw is None:
        # keep (live (K, tile) f32 temporaries + double-buffered IO) well under VMEM
        budget = min(int(0.4 * phys), 40 * 1024 * 1024)
        per_col = 4 * (8 * k + 12 * d + 24)
        tile_hw = max(128, min(8192, (budget // per_col) // 128 * 128))
    tile_hw = max(128, _round_up(int(tile_hw), 128))
    if hw % 128 == 0:
        tile_hw = min(tile_hw, hw)
    elif hw < tile_hw:
        tile_hw = hw                      # single full-extent block (handles hw < 128)

    num_tiles = pl.cdiv(hw, tile_hw)
    ragged = (hw % tile_hw) != 0

    e = embedding.astype(jnp.float32)
    es = e * jnp.float32(2.0 / temp)                        # fold 2/temp into codebook
    et = e.T                                                # (d, k), tiny, once per call
    bias = -jnp.sum(e * e, axis=1, keepdims=True) / temp    # (k, 1)

    kernel = functools.partial(_vq_kernel, n_codes=k, tile_hw=tile_hw, hw=hw,
                               ragged=ragged)

    est_vmem = (
        4 * tile_hw * (8 * k + 8 * d + 16)       # live (K,TN)/(D,TN)/(1,TN) temporaries
        + 4 * (2 * 2 * d * tile_hw)              # z in + z_q out, double-buffered
        + 4 * 2 * tile_hw                        # idx out, double-buffered
        + 4 * 2 * (k * 128 + 128)                # resident psum / mse blocks
        + 4 * (2 * 2 * k * d + 2 * k)            # es / et / bias
        + (2 << 20)                              # headroom
    )
    vmem_limit = int(min(max(est_vmem, 32 * 1024 * 1024), int(0.6 * phys)))

    zq3, idx, psum, msum = pl.pallas_call(
        kernel,
        out_shape=(
            jax.ShapeDtypeStruct((bt, d, hw), jnp.float32),
            jax.ShapeDtypeStruct((bt, 1, hw), jnp.int32),
            jax.ShapeDtypeStruct((k, bt * 128), jnp.float32),
            jax.ShapeDtypeStruct((1, bt * 128), jnp.float32),
        ),
        grid_spec=pltpu.PrefetchScalarGridSpec(
            num_scalar_prefetch=0,
            grid=(bt, num_tiles),
            in_specs=[
                pl.BlockSpec((1, d, tile_hw), lambda b, j: (b, 0, j)),  # z tile
                pl.BlockSpec((k, d), lambda b, j: (0, 0)),              # scaled codebook
                pl.BlockSpec((d, k), lambda b, j: (0, 0)),              # codebook^T
                pl.BlockSpec((k, 1), lambda b, j: (0, 0)),              # -||e||^2/temp
            ],
            out_specs=[
                pl.BlockSpec((1, d, tile_hw), lambda b, j: (b, 0, j)),  # z_q (lane-dense)
                pl.BlockSpec((1, 1, tile_hw), lambda b, j: (b, 0, j)),  # argmax indices
                pl.BlockSpec((k, 128), lambda b, j: (0, b)),            # per-batch code sums
                pl.BlockSpec((1, 128), lambda b, j: (0, b)),            # per-batch sum sq err
            ],
        ),
        compiler_params=pltpu.CompilerParams(
            dimension_semantics=("parallel", "arbitrary"),
            vmem_limit_bytes=vmem_limit,
        ),
    )(z3.astype(jnp.float32), es, et, bias)

    indices = idx[:, 0, :]                                        # (bt, hw)
    code_sums = psum.reshape(k, bt, 128)[:, :, 0].sum(axis=1)     # (k,)
    sum_sq = msum.reshape(bt, 128)[:, 0].sum()                    # ()
    return zq3, indices, code_sums, sum_sq


class VectorQuantizerGumbelSoftmaxPallas:
    """Eval-mode (self.training == False) forward of the PyTorch module."""

    def __init__(self, n_e, e_dim, beta, initial_temp=1.0, min_temp=0.5,
                 anneal_rate=3e-05, key=None):
        self.n_e = n_e
        self.e_dim = e_dim
        self.beta = beta
        self.initial_temp = initial_temp
        self.temp = initial_temp
        self.min_temp = min_temp
        self.anneal_rate = anneal_rate
        if key is None:
            key = jax.random.PRNGKey(42)
        # nn.Embedding weight init: uniform(-1/n_e, 1/n_e), shape (n_e, e_dim)
        self.embedding = jax.random.uniform(
            key, (n_e, e_dim), dtype=jnp.float32,
            minval=-1.0 / n_e, maxval=1.0 / n_e)

    def __call__(self, z, current_step=None, materialize_one_hot=True):
        # z: (bt, ch, h, w) NCHW, ch == e_dim
        bt, ch, h, w = z.shape
        assert ch == self.e_dim
        if current_step is not None:
            self.temp = max(self.min_temp,
                            self.initial_temp * math.exp(-self.anneal_rate * current_step))

        n = bt * h * w
        # NCHW -> (bt, ch, h*w): a pure reshape (no transpose, no extra HBM pass)
        z3 = z.reshape(bt, ch, h * w)

        zq3, indices, code_sums, sum_sq = vq_pallas(z3, self.embedding, self.temp)

        z_q = zq3.reshape(bt, ch, h, w)

        # losses (forward values; detach only affects grads). MSE fused in-kernel.
        mse = sum_sq / (n * ch)
        commitment_loss = self.beta * mse
        codebook_loss = mse
        loss = codebook_loss + commitment_loss

        # indices are in the same (b, y, x) row order as the reference NHWC flatten
        min_encoding_indices = indices.reshape(bt, h, w)
        if materialize_one_hot:
            min_encodings = jax.nn.one_hot(indices.reshape(-1), self.n_e,
                                           dtype=jnp.float32)
        else:
            min_encodings = None  # skip the (N, n_e) HBM write if caller doesn't need it

        avg_probs = code_sums / n
        perplexity = jnp.exp(-jnp.sum(avg_probs * jnp.log(avg_probs + 1e-10)))

        # TODO(synk): training-mode Gumbel-noise branch (torch.rand_like) not
        # implemented; would use pltpu.prng_seed / pltpu.prng_random_bits in-kernel.
        return loss, z_q, perplexity, min_encodings, min_encoding_indices


def _reference(z, embedding, temp, beta):
    """Pure-JAX eval-mode reference mirroring the PyTorch module."""
    bt, ch, h, w = z.shape
    z_nhwc = jnp.transpose(z, (0, 2, 3, 1))
    zf = z_nhwc.reshape(-1, ch)
    d = (jnp.sum(zf ** 2, axis=1, keepdims=True)
         + jnp.sum(embedding ** 2, axis=1)
         - 2.0 * zf @ embedding.T)
    soft = jax.nn.softmax(-d / temp, axis=1)
    zq = (soft @ embedding).reshape(bt, h, w, ch).transpose(0, 3, 1, 2)
    mse = jnp.mean((zq - z) ** 2)
    loss = mse + beta * mse
    idx = jnp.argmax(soft, axis=1)
    avg = jnp.mean(soft, axis=0)
    ppl = jnp.exp(-jnp.sum(avg * jnp.log(avg + 1e-10)))
    return loss, zq, ppl, idx


if __name__ == "__main__":
    key = jax.random.PRNGKey(0)
    k_z, k_emb = jax.random.split(key)

    bt, ch, h, w = 2, 4, 16, 16     # e_dim = ch = 4
    n_e = 128
    beta = 0.25

    z = jax.random.normal(k_z, (bt, ch, h, w), dtype=jnp.float32)

    vq = VectorQuantizerGumbelSoftmaxPallas(n_e=n_e, e_dim=ch, beta=beta, key=k_emb)
    outs = vq(z)
    jax.block_until_ready(outs)
    loss, z_q, perplexity, min_encodings, min_encoding_indices = outs

    # shape sanity
    assert z_q.shape == (bt, ch, h, w)
    assert min_encodings.shape == (bt * h * w, n_e)
    assert min_encoding_indices.shape == (bt, h, w)

    # numerical sanity vs pure-JAX reference
    ref_loss, ref_zq, ref_ppl, ref_idx = _reference(z, vq.embedding, vq.temp, beta)
    assert bool(jnp.allclose(z_q, ref_zq, atol=1e-4)), "z_q mismatch"
    assert bool(jnp.allclose(loss, ref_loss, rtol=1e-3, atol=1e-6)), "loss mismatch"
    assert bool(jnp.allclose(perplexity, ref_ppl, rtol=1e-3)), "perplexity mismatch"
    match_frac = jnp.mean((min_encoding_indices.reshape(-1) == ref_idx).astype(jnp.float32))
    assert float(match_frac) >= 0.99, "argmax indices mismatch"

    print("KERNEL_OK")
</pallas_src>

<mosaic_0001>
module attributes {stable_mosaic.version = 11 : i64} {
  func.func @_vq_kernel(%arg0: i32, %arg1: i32, %arg2: memref<1x4x256xf32, #tpu.memory_space<vmem>>, %arg3: memref<128x4xf32, #tpu.memory_space<vmem>>, %arg4: memref<4x128xf32, #tpu.memory_space<vmem>>, %arg5: memref<128x1xf32, #tpu.memory_space<vmem>>, %arg6: memref<1x4x256xf32, #tpu.memory_space<vmem>>, %arg7: memref<1x1x256xi32, #tpu.memory_space<vmem>>, %arg8: memref<128x128xf32, #tpu.memory_space<vmem>>, %arg9: memref<1x128xf32, #tpu.memory_space<vmem>>) attributes {dimension_semantics = [#tpu.dimension_semantics<parallel>, #tpu.dimension_semantics<arbitrary>], iteration_bounds = array<i64: 2, 1>, scalar_prefetch = 0 : i64, scratch_operands = 0 : i64, tpu.core_type = #tpu.core_type<tc>, window_params = [{transform_indices = @transform_0, window_bounds = array<i64: 1, 4, 256>}, {pipeline_mode = #tpu.pipeline_mode<synchronous>, transform_indices = @transform_1, window_bounds = array<i64: 128, 4>}, {pipeline_mode = #tpu.pipeline_mode<synchronous>, transform_indices = @transform_2, window_bounds = array<i64: 4, 128>}, {pipeline_mode = #tpu.pipeline_mode<synchronous>, transform_indices = @transform_3, window_bounds = array<i64: 128, 1>}, {transform_indices = @transform_4, window_bounds = array<i64: 1, 4, 256>}, {transform_indices = @transform_5, window_bounds = array<i64: 1, 1, 256>}, {transform_indices = @transform_6, window_bounds = array<i64: 128, 128>}, {transform_indices = @transform_7, window_bounds = array<i64: 1, 128>}]} {
    %c0 = arith.constant 0 : index
    %c0_0 = arith.constant 0 : index
    %c0_1 = arith.constant 0 : index
    %0 = vector.load %arg2[%c0, %c0_0, %c0_1] : memref<1x4x256xf32, #tpu.memory_space<vmem>>, vector<1x4x256xf32>
    %1 = vector.shape_cast %0 : vector<1x4x256xf32> to vector<4x256xf32>
    %c0_2 = arith.constant 0 : index
    %c0_3 = arith.constant 0 : index
    %2 = vector.load %arg3[%c0_2, %c0_3] : memref<128x4xf32, #tpu.memory_space<vmem>>, vector<128x4xf32>
    %c0_4 = arith.constant 0 : index
    %c0_5 = arith.constant 0 : index
    %3 = vector.load %arg4[%c0_4, %c0_5] : memref<4x128xf32, #tpu.memory_space<vmem>>, vector<4x128xf32>
    %c0_6 = arith.constant 0 : index
    %c0_7 = arith.constant 0 : index
    %4 = vector.load %arg5[%c0_6, %c0_7] : memref<128x1xf32, #tpu.memory_space<vmem>>, vector<128x1xf32>
    %cst = arith.constant dense<0.000000e+00> : vector<128x256xf32>
    %5 = tpu.matmul %2, %1, %cst {dimension_numbers = #tpu.dot_dimension_numbers<[1], [0], [0], [1], [0, 0, 1, 1], [], []>} : vector<128x4xf32>, vector<4x256xf32>, vector<128x256xf32> -> vector<128x256xf32>
    %6 = vector.broadcast %4 : vector<128x1xf32> to vector<128x256xf32>
    %7 = arith.addf %5, %6 : vector<128x256xf32>
    %cst_8 = arith.constant dense<0xFF800000> : vector<256xf32>
    %8 = vector.multi_reduction <maximumf>, %7, %cst_8 [0] : vector<128x256xf32> to vector<256xf32>
    %9 = vector.shape_cast %8 : vector<256xf32> to vector<1x256xf32>
    %10 = tpu.iota {dimensions = array<i32: 0>} : vector<128x1xi32>
    %11 = vector.broadcast %9 : vector<1x256xf32> to vector<128x256xf32>
    %12 = arith.cmpf oeq, %7, %11 : vector<128x256xf32>
    %c128_i32 = arith.constant 128 : i32
    %13 = vector.shape_cast %10 : vector<128x1xi32> to vector<128x1xi32>
    %14 = vector.broadcast %13 : vector<128x1xi32> to vector<128x256xi32>
    %15 = vector.broadcast %c128_i32 : i32 to vector<128x256xi32>
    %16 = arith.select %12, %14, %15 : vector<128x256xi1>, vector<128x256xi32>
    %cst_9 = arith.constant dense<2147483647> : vector<256xi32>
    %17 = vector.multi_reduction <minsi>, %16, %cst_9 [0] : vector<128x256xi32> to vector<256xi32>
    %18 = vector.shape_cast %17 : vector<256xi32> to vector<1x256xi32>
    %c0_10 = arith.constant 0 : index
    %c0_11 = arith.constant 0 : index
    %c0_12 = arith.constant 0 : index
    %19 = vector.load %arg7[%c0_10, %c0_11, %c0_12] : memref<1x1x256xi32, #tpu.memory_space<vmem>>, vector<1x1x256xi32>
    %20 = vector.shape_cast %19 : vector<1x1x256xi32> to vector<1x256xi32>
    %21 = vector.shape_cast %18 : vector<1x256xi32> to vector<1x1x256xi32>
    tpu.vector_store %arg7[%c0_10, %c0_11, %c0_12], %21 {strides = array<i32>} : memref<1x1x256xi32, #tpu.memory_space<vmem>>, vector<1x1x256xi32>,
    %22 = vector.broadcast %9 : vector<1x256xf32> to vector<128x256xf32>
    %23 = arith.subf %7, %22 : vector<128x256xf32>
    %24 = math.exp %23 : vector<128x256xf32>
    %cst_13 = arith.constant dense<0.000000e+00> : vector<256xf32>
    %25 = vector.multi_reduction <add>, %24, %cst_13 [0] : vector<128x256xf32> to vector<256xf32>
    %26 = vector.shape_cast %25 : vector<256xf32> to vector<1x256xf32>
    %cst_14 = arith.constant 1.000000e+00 : f32
    %27 = vector.broadcast %cst_14 : f32 to vector<1x256xf32>
    %28 = arith.divf %27, %26 : vector<1x256xf32>
    %29 = vector.broadcast %28 : vector<1x256xf32> to vector<128x256xf32>
    %30 = arith.mulf %24, %29 : vector<128x256xf32>
    %cst_15 = arith.constant dense<0.000000e+00> : vector<4x256xf32>
    %31 = tpu.matmul %3, %30, %cst_15 {dimension_numbers = #tpu.dot_dimension_numbers<[1], [0], [0], [1], [0, 0, 1, 1], [], []>} : vector<4x128xf32>, vector<128x256xf32>, vector<4x256xf32> -> vector<4x256xf32>
    %c0_16 = arith.constant 0 : index
    %c0_17 = arith.constant 0 : index
    %c0_18 = arith.constant 0 : index
    %32 = vector.load %arg6[%c0_16, %c0_17, %c0_18] : memref<1x4x256xf32, #tpu.memory_space<vmem>>, vector<1x4x256xf32>
    %33 = vector.shape_cast %32 : vector<1x4x256xf32> to vector<4x256xf32>
    %34 = vector.shape_cast %31 : vector<4x256xf32> to vector<1x4x256xf32>
    tpu.vector_store %arg6[%c0_16, %c0_17, %c0_18], %34 {strides = array<i32>} : memref<1x4x256xf32, #tpu.memory_space<vmem>>, vector<1x4x256xf32>,
    %35 = arith.subf %31, %1 : vector<4x256xf32>
    %36 = arith.mulf %35, %35 : vector<4x256xf32>
    %cst_19 = arith.constant dense<0.000000e+00> : vector<256xf32>
    %37 = vector.multi_reduction <add>, %36, %cst_19 [0] : vector<4x256xf32> to vector<256xf32>
    %38 = vector.shape_cast %37 : vector<256xf32> to vector<1x256xf32>
    %c0_i32 = arith.constant 0 : i32
    %39 = arith.cmpi eq, %arg1, %c0_i32 : i32
    %40 = arith.extui %39 : i1 to i32
    %c0_i32_20 = arith.constant 0 : i32
    %41 = arith.cmpi ne, %40, %c0_i32_20 : i32
    scf.if %41 {
      %cst_31 = arith.constant 0.000000e+00 : f32
      %54 = vector.broadcast %cst_31 : f32 to vector<128x128xf32>
      %c0_32 = arith.constant 0 : index
      %c0_33 = arith.constant 0 : index
      %55 = vector.load %arg8[%c0_32, %c0_33] : memref<128x128xf32, #tpu.memory_space<vmem>>, vector<128x128xf32>
      tpu.vector_store %arg8[%c0_32, %c0_33], %54 {strides = array<i32>} : memref<128x128xf32, #tpu.memory_space<vmem>>, vector<128x128xf32>,
      %cst_34 = arith.constant 0.000000e+00 : f32
      %56 = vector.broadcast %cst_34 : f32 to vector<1x128xf32>
      %c0_35 = arith.constant 0 : index
      %c0_36 = arith.constant 0 : index
      %57 = vector.load %arg9[%c0_35, %c0_36] : memref<1x128xf32, #tpu.memory_space<vmem>>, vector<1x128xf32>
      tpu.vector_store %arg9[%c0_35, %c0_36], %56 {strides = array<i32>} : memref<1x128xf32, #tpu.memory_space<vmem>>, vector<1x128xf32>,
    } else {
    }
    %cst_21 = arith.constant dense<0.000000e+00> : vector<128xf32>
    %42 = vector.multi_reduction <add>, %30, %cst_21 [1] : vector<128x256xf32> to vector<128xf32>
    %43 = vector.shape_cast %42 : vector<128xf32> to vector<128x1xf32>
    %cst_22 = arith.constant dense<0.000000e+00> : vector<1xf32>
    %44 = vector.multi_reduction <add>, %38, %cst_22 [1] : vector<1x256xf32> to vector<1xf32>
    %45 = vector.shape_cast %44 : vector<1xf32> to vector<1x1xf32>
    %c0_23 = arith.constant 0 : index
    %c0_24 = arith.constant 0 : index
    %46 = vector.load %arg8[%c0_23, %c0_24] : memref<128x128xf32, #tpu.memory_space<vmem>>, vector<128x128xf32>
    %47 = vector.broadcast %43 : vector<128x1xf32> to vector<128x128xf32>
    %48 = arith.addf %46, %47 : vector<128x128xf32>
    %c0_25 = arith.constant 0 : index
    %c0_26 = arith.constant 0 : index
    %49 = vector.load %arg8[%c0_25, %c0_26] : memref<128x128xf32, #tpu.memory_space<vmem>>, vector<128x128xf32>
    tpu.vector_store %arg8[%c0_25, %c0_26], %48 {strides = array<i32>} : memref<128x128xf32, #tpu.memory_space<vmem>>, vector<128x128xf32>,
    %c0_27 = arith.constant 0 : index
    %c0_28 = arith.constant 0 : index
    %50 = vector.load %arg9[%c0_27, %c0_28] : memref<1x128xf32, #tpu.memory_space<vmem>>, vector<1x128xf32>
    %51 = vector.broadcast %45 : vector<1x1xf32> to vector<1x128xf32>
    %52 = arith.addf %50, %51 : vector<1x128xf32>
    %c0_29 = arith.constant 0 : index
    %c0_30 = arith.constant 0 : index
    %53 = vector.load %arg9[%c0_29, %c0_30] : memref<1x128xf32, #tpu.memory_space<vmem>>, vector<1x128xf32>
    tpu.vector_store %arg9[%c0_29, %c0_30], %52 {strides = array<i32>} : memref<1x128xf32, #tpu.memory_space<vmem>>, vector<1x128xf32>,
    return
  }
  func.func @transform_0(%arg0: i32, %arg1: i32) -> (i32, i32, i32) {
    %c0_i32 = arith.constant 0 : i32
    %c0_i32_0 = arith.constant 0 : i32
    return %arg0, %c0_i32, %arg1 : i32, i32, i32
  }
  func.func @transform_1(%arg0: i32, %arg1: i32) -> (i32, i32) {
    %c0_i32 = arith.constant 0 : i32
    %c0_i32_0 = arith.constant 0 : i32
    %c0_i32_1 = arith.constant 0 : i32
    return %c0_i32, %c0_i32_0 : i32, i32
  }
  func.func @transform_2(%arg0: i32, %arg1: i32) -> (i32, i32) {
    %c0_i32 = arith.constant 0 : i32
    %c0_i32_0 = arith.constant 0 : i32
    %c0_i32_1 = arith.constant 0 : i32
    return %c0_i32, %c0_i32_0 : i32, i32
  }
  func.func @transform_3(%arg0: i32, %arg1: i32) -> (i32, i32) {
    %c0_i32 = arith.constant 0 : i32
    %c0_i32_0 = arith.constant 0 : i32
    %c0_i32_1 = arith.constant 0 : i32
    return %c0_i32, %c0_i32_0 : i32, i32
  }
  func.func @transform_4(%arg0: i32, %arg1: i32) -> (i32, i32, i32) {
    %c0_i32 = arith.constant 0 : i32
    %c0_i32_0 = arith.constant 0 : i32
    return %arg0, %c0_i32, %arg1 : i32, i32, i32
  }
  func.func @transform_5(%arg0: i32, %arg1: i32) -> (i32, i32, i32) {
    %c0_i32 = arith.constant 0 : i32
    %c0_i32_0 = arith.constant 0 : i32
    return %arg0, %c0_i32, %arg1 : i32, i32, i32
  }
  func.func @transform_6(%arg0: i32, %arg1: i32) -> (i32, i32) {
    %c0_i32 = arith.constant 0 : i32
    %c0_i32_0 = arith.constant 0 : i32
    return %c0_i32, %arg0 : i32, i32
  }
  func.func @transform_7(%arg0: i32, %arg1: i32) -> (i32, i32) {
    %c0_i32 = arith.constant 0 : i32
    %c0_i32_0 = arith.constant 0 : i32
    return %c0_i32, %arg0 : i32, i32
  }
}

</mosaic_0001>

<bundles_post_ra>
// kernel: tpu_custom_call.1
= control target key start
LH: loop header
LB: loop body
LE: loop exit
PB: predicated region body
PF: predicated region fallthrough
CT: control target
= control target key end

     0   :  { %s3004_s0 = inlined_call_operand.vmem [shape: f32[2,4,256], index: 0, kind: input, shape index: {}]   ;;  %s3005_s1 = inlined_call_operand.vmem [shape: f32[128,4], index: 1, kind: input, shape index: {}]   ;;  %s3006_s2 = inlined_call_operand.vmem [shape: f32[4,128], index: 2, kind: input, shape index: {}]   ;;  %s3007_s3 = inlined_call_operand.vmem [shape: f32[128,1], index: 3, kind: input, shape index: {}]   ;;  %s3008_s4 = inlined_call_operand.hbm [shape: f32[2,4,256], index: 4, kind: output, shape index: {0}]   ;;  %s3009_s5 = inlined_call_operand.hbm [shape: s32[2,1,256], index: 5, kind: output, shape index: {1}]   ;;  %s3010_s6 = inlined_call_operand.hbm [shape: f32[128,256], index: 6, kind: output, shape index: {2}]   ;;  %s3011_s7 = inlined_call_operand.hbm [shape: f32[1,256], index: 7, kind: output, shape index: {3}]  }
   0x1   :  { %3028 = sst [smem:[#allocation24_spill]] %s3004_s0 }
   0x2   :  { %3029 = sst [smem:[#allocation25_spill]] %s3005_s1 }
   0x3   :  { %3030 = sst [smem:[#allocation26_spill]] %s3006_s2 }
   0x4   :  { %3031 = sst [smem:[#allocation27_spill]] %s3007_s3 }
   0x5   :  { %13 = vsyncpa [#allocation3], 0 }
   0x6   :  { %15 = vsyncpa [#allocation3 + $0x1], 0 }
   0x7   :  { %16 = vsyncpa [#allocation5], 0 }
   0x8   :  { %18 = vsyncpa [#allocation5 + $0x1], 0 }
   0x9   :  { %19 = vsyncpa [#allocation8], 0 }
   0xa   :  { %21 = vsyncpa [#allocation8 + $0x1], 0  ;;  %s1969_s24 = smov 0   ;;  %s1971_s25 = smov 0  }
   0xb   :  { %s1973_s26 = smov 0   ;;  %s1975_s27 = smov 0  }
   0xc   :  { %s1977_s28 = smov 0   ;;  %s1979_s29 = smov 0  }
   0xd LB: > { %s1525_s30 = sadd.s32 4294967295, %s1917_s29   ;;  %s3027_s8 = sadd.s32 4294967294, %s1917_s29   ;;  %s1917_s29 = sphi %s1979_s29, %s27_s29   ;;  %s1913_s28 = sphi %s1977_s28, %s3071_s28   ;;  %s1909_s27 = sphi %s1975_s27, %s3070_s27   ;;  %s1905_s26 = sphi %s1973_s26, %s3069_s26   ;;  %s1901_s25 = sphi %s1971_s25, %s3068_s25   ;;  %s1897_s24 = sphi %s1969_s24, %s3067_s24  }
   0xe   : > { %s39_s9 = sadd.s32 1, %s1913_s28  ;;  %s139_s10 = sadd.s32 1, %s1905_s26 }
   0xf   : > { %p41_p0 = scmp.ge.s32.totalorder %s39_s9, 2  ;;  %p149_p1 = scmp.ne.s32.totalorder %s1905_s26, %s1901_s25 }
  0x10   : > { %p150_p2 = scmp.eq.s32.totalorder %s1525_s30, 1  ;;  %p155_p3 = scmp.ne.s32.totalorder %s1901_s25, %s1897_s24 }
  0x11   : > { %s3073_s9 = smov (%p41_p0, %s39_s9), 0  ;;  %p156_p5 = scmp.eq.s32.totalorder %s3027_s8, 1 }
  0x12   : > { %p2011_p4 = por %p150_p2, %p149_p1  ;;  %s134_s12 = ssub.s32 %s1913_s28, %s3073_s9 }
  0x13   : > { %p1529_p6 = scmp.ge.s32.totalorder %s1917_s29, 1  ;;  %p137_p7 = scmp.eq.s32.totalorder %s134_s12, 0 }
  0x14   : > { %p2020_p8 = por %p156_p5, %p155_p3  ;;  %p276_p9 = scmp.lt.s32.totalorder %s1917_s29, 3 }
  0x15   : > { %s2026_s14 = scalar_select %p137_p7, %s1905_s26, %s139_s10  }
  0x16   : > { %p277_p10 = pnand %p1529_p6, %p276_p9 }
  0x18   : > { %280 = sbr.rel (%p277_p10) target bundleno = 876 (0x36c), region = 36 }
  0x1f   : > { %p327_p11 = scmp.lt.s32.totalorder %s1909_s27, 1  ;;  %v3013_v0 = vmov 0.0   ;;  %v1920_v1 = vmov 0   ;;  %s3034_s0 = sld [smem:[#allocation24_spill]]  ;;  %vm3012_vm0 = vcmask 1043456   ;;  %vm454_vm1 = vcmask 31744  }
  0x20   : > { %572 = vmatprep.mubr.f32.mxu0 %v3013_v0  ;;  %1128 = vmatprep.mubr.f32.mxu1 %v3013_v0  ;;  %s3035_s3 = sld [smem:[#allocation27_spill]]  ;;  %s3037_s1 = sld [smem:[#allocation25_spill]] }
  0x21   : > { %s328_s15 = scalar_select %p327_p11, %s1909_s27, 1  ;;  %1675 = vset.pattern.permute.xlu0 %v1920_v1  ;;  %1676 = vset.pattern.permute.xlu1 %v1920_v1 }
  0x22   : > { %s2641_s10 = sand.u32 1, %s1901_s25   ;;  %s3061_s2 = sld [smem:[#allocation26_spill]] }
  0x23   : > { %s1564_s16 = sshll.u32 %s328_s15, 3  ;;  %s1531_s12 = sshll.u32 %s2641_s10, 1 }
  0x24   : > { %s2675_s15 = scalar_lea.vmem [#allocation4], %s1531_s12  ;;  %s1532_s18 = sshll.u32 %s2641_s10, 7 }
  0x25   : > { %s2035_s19 = scalar_lea.vmem %s3034_s0, %s1564_s16  ;;  %s2813_s20 = scalar_lea.vmem [#allocation6], %s1532_s18 }
  0x26   : > { %v356_v2 = vld [vmem:[%s3035_s3] sm:$0xff]  ;;  %v358_v4 = vld [vmem:[%s3035_s3 + $0x10] sm:$0xff]  ;;  %v357_v6 = vld [vmem:[%s3035_s3 + $0x8] sm:$0xff]  ;;  %s1530_s21 = sshll.u32 %s2641_s10, 3  ;;  %s2846_s23 = sand.u32 1, %s1525_s30  }
  0x27   : > { %v338_v3 = vld [vmem:[%s2035_s19] sm:$0xff]  ;;  %374 = vperm.xlu0 %1675, %v356_v2   ;;  %384 = vperm.xlu1 %1676, %v358_v4   ;;  %v359_v8 = vld [vmem:[%s3035_s3 + $0x18] sm:$0xff]  ;;  %v340_v10 = vld [vmem:[%s3037_s1 + $0x8] sm:$0xff]  ;;  %s2834_s22 = scalar_lea.vmem [#allocation2], %s1530_s21  ;;  %s1566_s12 = sshll.u32 %s1909_s27, 5 }
  0x28   : > { %v2044_v5 = vcombine.high %v338_v3, %v338_v3  ;;  %v339_v7 = vld [vmem:[%s3037_s1] sm:$0xff]  ;;  %v361_v11 = vld [vmem:[%s3035_s3 + $0x28] sm:$0xff]  ;;  %v362_v12 = vld [vmem:[%s3035_s3 + $0x30] sm:$0xff]  ;;  %s2852_s18 = scalar_lea.hbm %s3009_s5, %s1566_s12  ;;  %s1329_s21 = sshll.u32 %s2675_s15, 4  ;;  %s2855_s21 = int_to_ptr.vmem [resolvable:$true] %s1329_s21 }
  0x29   : > { %v360_v9 = vld [vmem:[%s3035_s3 + $0x20] sm:$0xff]  ;;  %v341_v13 = vld [vmem:[%s3037_s1 + $0x10] sm:$0xff]  ;;  %v363_v14 = vld [vmem:[%s3035_s3 + $0x38] sm:$0xff]  ;;  %s1565_s8 = sshll.u32 %s1909_s27, 7  ;;  %s1288_s0 = scalar_lea.sflag [#allocation5], %s2846_s23 }
  0x2a   : > { %3036 = vst [vmem:[#allocation12_spill] sm:$0xff] %v2044_v5  ;;  %1535 = vmatprep.subr.msk.mxu0 %vm3012_vm0, %v2044_v5  ;;  %v364_v15 = vld [vmem:[%s3035_s3 + $0x40] sm:$0xff]  ;;  %v342_v16 = vld [vmem:[%s3037_s1 + $0x18] sm:$0xff]  ;;  %v365_v17 = vld [vmem:[%s3035_s3 + $0x48] sm:$0xff]  ;;  %s1922_s30 = smov [#allocation4]  }
  0x2b   : > { %1536 = vmatpush1.msk.msra.mxu0 %vm3012_vm0, %v338_v3  ;;  %379 = vperm.xlu0 %1675, %v357_v6   ;;  %v366_v18 = vld [vmem:[%s3035_s3 + $0x50] sm:$0xff]  ;;  %v343_v19 = vld [vmem:[%s3037_s1 + $0x20] sm:$0xff]  ;;  %v367_v20 = vld [vmem:[%s3035_s3 + $0x58] sm:$0xff] }
  0x2c   : > { %1537 = vmatmul.mubr.msk.f32.vlgmr.msra.gmra.mrb[0].mxu0 %vm454_vm1, %v339_v7  ;;  %389 = vperm.xlu1 %1676, %v359_v8   ;;  %v368_v21 = vld [vmem:[%s3035_s3 + $0x60] sm:$0xff]  ;;  %v344_v22 = vld [vmem:[%s3037_s1 + $0x28] sm:$0xff]  ;;  %v370_v24 = vld [vmem:[%s3035_s3 + $0x70] sm:$0xff] }
  0x2d   : > { %578 = vmatprep.mubr.f32.mxu0 %v3013_v0  ;;  %v369_v23 = vld [vmem:[%s3035_s3 + $0x68] sm:$0xff]  ;;  %v345_v25 = vld [vmem:[%s3037_s1 + $0x30] sm:$0xff]  ;;  %v371_v26 = vld [vmem:[%s3035_s3 + $0x78] sm:$0xff] }
  0x2e   : > { %v346_v27 = vld [vmem:[%s3037_s1 + $0x38] sm:$0xff]  ;;  %v347_v28 = vld [vmem:[%s3037_s1 + $0x40] sm:$0xff]  ;;  %v348_v29 = vld [vmem:[%s3037_s1 + $0x48] sm:$0xff] }
  0x2f   : > { %394 = vperm.xlu0 %1675, %v360_v9   ;;  %v349_v30 = vld [vmem:[%s3037_s1 + $0x50] sm:$0xff]  ;;  %v350_v31 = vld [vmem:[%s3037_s1 + $0x58] sm:$0xff]  ;;  %v351_v32 = vld [vmem:[%s3037_s1 + $0x60] sm:$0xff] }
  0x30   : > { %1538 = vmatmul.mubr.msk.f32.gmra.mrb[2].mxu0 %vm454_vm1, %v340_v10  ;;  %399 = vperm.xlu1 %1676, %v361_v11   ;;  %v352_v33 = vld [vmem:[%s3037_s1 + $0x68] sm:$0xff]  ;;  %v353_v34 = vld [vmem:[%s3037_s1 + $0x70] sm:$0xff]  ;;  %v354_v35 = vld [vmem:[%s3037_s1 + $0x78] sm:$0xff]  ;;  %s1747_s1 = scalar_lea.vmem %s2855_s21, 32 }
  0x31   : > { %584 = vmatprep.mubr.f32.mxu0 %v3013_v0  ;;  %p1748_p12 = scmp.ne.s32.totalorder %s2855_s21, %s1747_s1 }
  0x33   : > { %404 = vperm.xlu0 %1675, %v362_v12   ;;  %p1749_p13 = pnand %p1748_p12, %p2011_p4 }
  0x34   : > { %1539 = vmatmul.mubr.msk.f32.gmra.mrb[4].mxu0 %vm454_vm1, %v341_v13  ;;  %409 = vperm.xlu1 %1676, %v363_v14  }
  0x35   : > { %590 = vmatprep.mubr.f32.mxu0 %v3013_v0  ;;  %p1750_p0 = pneg %p1749_p13 }
  0x37   : > { %414 = vperm.xlu0 %1675, %v364_v15  }
  0x38   : > { %1540 = vmatmul.mubr.msk.f32.gmra.mrb[6].mxu0 %vm454_vm1, %v342_v16  ;;  %419 = vperm.xlu1 %1676, %v365_v17  }
  0x39   : > { %596 = vmatprep.mubr.f32.mxu0 %v3013_v0 }
  0x3b   : > { %424 = vperm.xlu0 %1675, %v366_v18  }
  0x3c   : > { %1541 = vmatmul.mubr.msk.f32.gmra.mrb[8].mxu0 %vm454_vm1, %v343_v19  ;;  %429 = vperm.xlu1 %1676, %v367_v20  }
  0x3d   : > { %602 = vmatprep.mubr.f32.mxu0 %v3013_v0 }
  0x3f   : > { %434 = vperm.xlu0 %1675, %v368_v21  }
  0x40   : > { %1542 = vmatmul.mubr.msk.f32.gmra.mrb[10].mxu0 %vm454_vm1, %v344_v22  ;;  %439 = vperm.xlu1 %1676, %v369_v23  }
  0x41   : > { %608 = vmatprep.mubr.f32.mxu0 %v3013_v0 }
  0x43   : > { %444 = vperm.xlu0 %1675, %v370_v24  }
  0x44   : > { %1543 = vmatmul.mubr.msk.f32.gmra.mrb[12].mxu0 %vm454_vm1, %v345_v25  ;;  %449 = vperm.xlu1 %1676, %v371_v26  }
  0x45   : > { %614 = vmatprep.mubr.f32.mxu0 %v3013_v0 }
  0x48   : > { %1544 = vmatmul.mubr.msk.f32.gmra.mrb[14].mxu0 %vm454_vm1, %v346_v27 }
  0x49   : > { %620 = vmatprep.mubr.f32.mxu0 %v3013_v0 }
  0x4c   : > { %1545 = vmatmul.mubr.msk.f32.gmra.mrb[16].mxu0 %vm454_vm1, %v347_v28 }
  0x4d   : > { %626 = vmatprep.mubr.f32.mxu0 %v3013_v0 }
  0x50   : > { %1546 = vmatmul.mubr.msk.f32.gmra.mrb[18].mxu0 %vm454_vm1, %v348_v29 }
  0x51   : > { %632 = vmatprep.mubr.f32.mxu0 %v3013_v0 }
  0x54   : > { %1547 = vmatmul.mubr.msk.f32.gmra.mrb[20].mxu0 %vm454_vm1, %v349_v30 }
  0x55   : > { %638 = vmatprep.mubr.f32.mxu0 %v3013_v0 }
  0x58   : > { %1548 = vmatmul.mubr.msk.f32.gmra.mrb[22].mxu0 %vm454_vm1, %v350_v31 }
  0x59   : > { %644 = vmatprep.mubr.f32.mxu0 %v3013_v0 }
  0x5c   : > { %1549 = vmatmul.mubr.msk.f32.gmra.mrb[24].mxu0 %vm454_vm1, %v351_v32 }
  0x5d   : > { %650 = vmatprep.mubr.f32.mxu0 %v3013_v0 }
  0x60   : > { %1550 = vmatmul.mubr.msk.f32.gmra.mrb[26].mxu0 %vm454_vm1, %v352_v33 }
  0x61   : > { %656 = vmatprep.mubr.f32.mxu0 %v3013_v0 }
  0x64   : > { %1551 = vmatmul.mubr.msk.f32.gmra.mrb[28].mxu0 %vm454_vm1, %v353_v34 }
  0x65   : > { %662 = vmatprep.mubr.f32.mxu0 %v3013_v0 }
  0x68   : > { %1552 = vmatmul.mubr.msk.f32.gmra.mrb[30].mxu0 %vm454_vm1, %v354_v35 }
  0xa6   : > { %v375_v38 = vpop.permute.xlu0 %374  ;;  %v385_v41 = vpop.permute.xlu1 %384 }
  0xaa   : > { %v380_v47 = vpop.permute.xlu0 %379 }
  0xab   : > { %v390_v50 = vpop.permute.xlu1 %389 }
  0xae   : > { %v395_v59 = vpop.permute.xlu0 %394 }
  0xaf   : > { %v400_v3 = vpop.permute.xlu1 %399 }
  0xb2   : > { %v405_v11 = vpop.permute.xlu0 %404 }
  0xb3   : > { %v410_v18 = vpop.permute.xlu1 %409 }
  0xb6   : > { %v415_v25 = vpop.permute.xlu0 %414 }
  0xb7   : > { %v420_v32 = vpop.permute.xlu1 %419 }
  0xff   : > { %v574_v36 = vpop.f32.mrb[0].mxu0 }
 0x100   : > { %v576_v37 = vpop.f32.mrb[1].mxu0  ;;  %v2170_v43 = vadd.f32 %v574_v36, %v375_v38 }
 0x101   : > { %v2174_v46 = vadd.f32 %v576_v37, %v375_v38 }
 0x103   : > { %v580_v39 = vpop.f32.mrb[2].mxu0 }
 0x104   : > { %v582_v40 = vpop.f32.mrb[3].mxu0  ;;  %v2182_v53 = vadd.f32 %v580_v39, %v380_v47  ;;  %v425_v39 = vpop.permute.xlu0 %424 }
 0x105   : > { %v2186_v56 = vadd.f32 %v582_v40, %v380_v47 }
 0x107   : > { %v586_v42 = vpop.f32.mrb[4].mxu0 }
 0x108   : > { %v2172_v44 = vadd.f32 %v586_v42, %v385_v41  ;;  %v588_v45 = vpop.f32.mrb[5].mxu0 }
 0x109   : > { %v2176_v48 = vadd.f32 %v588_v45, %v385_v41 }
 0x10a   : > { %v669_v49 = vmax.f32 %v2170_v43, %v2172_v44 }
 0x10b   : > { %v690_v51 = vmax.f32 %v2174_v46, %v2176_v48  ;;  %v592_v52 = vpop.f32.mrb[6].mxu0 }
 0x10c   : > { %v2184_v54 = vadd.f32 %v592_v52, %v390_v50  ;;  %v594_v55 = vpop.f32.mrb[7].mxu0 }
 0x10d   : > { %v2188_v57 = vadd.f32 %v594_v55, %v390_v50  ;;  %v430_v50 = vpop.permute.xlu1 %429 }
 0x10e   : > { %v670_v58 = vmax.f32 %v2182_v53, %v2184_v54 }
 0x10f   : > { %v691_v60 = vmax.f32 %v2186_v56, %v2188_v57  ;;  %v598_v61 = vpop.f32.mrb[8].mxu0 }
 0x110   : > { %v2194_v62 = vadd.f32 %v598_v61, %v395_v59  ;;  %v600_v63 = vpop.f32.mrb[9].mxu0  ;;  %v435_v61 = vpop.permute.xlu0 %434 }
 0x111   : > { %v2196_v1 = vadd.f32 %v600_v63, %v395_v59 }
 0x112   : > { %v671_v2 = vmax.f32 %v669_v49, %v2194_v62 }
 0x113   : > { %v692_v4 = vmax.f32 %v690_v51, %v2196_v1  ;;  %v604_v6 = vpop.f32.mrb[10].mxu0 }
 0x114   : > { %v2200_v7 = vadd.f32 %v604_v6, %v400_v3  ;;  %v606_v8 = vpop.f32.mrb[11].mxu0 }
 0x115   : > { %v2202_v9 = vadd.f32 %v606_v8, %v400_v3 }
 0x116   : > { %v672_v10 = vmax.f32 %v670_v58, %v2200_v7 }
 0x117   : > { %v693_v12 = vmax.f32 %v691_v60, %v2202_v9  ;;  %v610_v13 = vpop.f32.mrb[12].mxu0 }
 0x118   : > { %v2206_v14 = vadd.f32 %v610_v13, %v405_v11  ;;  %v612_v15 = vpop.f32.mrb[13].mxu0 }
 0x119   : > { %v2208_v16 = vadd.f32 %v612_v15, %v405_v11 }
 0x11a   : > { %v673_v17 = vmax.f32 %v671_v2, %v2206_v14 }
 0x11b   : > { %v694_v19 = vmax.f32 %v692_v4, %v2208_v16  ;;  %v616_v20 = vpop.f32.mrb[14].mxu0 }
 0x11c   : > { %v2212_v21 = vadd.f32 %v616_v20, %v410_v18  ;;  %v618_v22 = vpop.f32.mrb[15].mxu0 }
 0x11d   : > { %v2214_v23 = vadd.f32 %v618_v22, %v410_v18 }
 0x11e   : > { %v674_v24 = vmax.f32 %v672_v10, %v2212_v21  ;;  %v440_v10 = vpop.permute.xlu1 %439 }
 0x11f   : > { %v695_v26 = vmax.f32 %v693_v12, %v2214_v23  ;;  %v622_v27 = vpop.f32.mrb[16].mxu0 }
 0x120   : > { %v2218_v28 = vadd.f32 %v622_v27, %v415_v25  ;;  %v624_v29 = vpop.f32.mrb[17].mxu0 }
 0x121   : > { %v2220_v30 = vadd.f32 %v624_v29, %v415_v25 }
 0x122   : > { %v675_v31 = vmax.f32 %v673_v17, %v2218_v28  ;;  %v450_v29 = vpop.permute.xlu1 %449 }
 0x123   : > { %v696_v33 = vmax.f32 %v694_v19, %v2220_v30  ;;  %v628_v34 = vpop.f32.mrb[18].mxu0  ;;  %v445_v19 = vpop.permute.xlu0 %444 }
 0x124   : > { %v2224_v35 = vadd.f32 %v628_v34, %v420_v32  ;;  %v630_v36 = vpop.f32.mrb[19].mxu0 }
 0x125   : > { %v2226_v37 = vadd.f32 %v630_v36, %v420_v32 }
 0x126   : > { %v676_v38 = vmax.f32 %v674_v24, %v2224_v35 }
 0x127   : > { %v697_v40 = vmax.f32 %v695_v26, %v2226_v37  ;;  %v634_v41 = vpop.f32.mrb[20].mxu0 }
 0x128   : > { %v2230_v42 = vadd.f32 %v634_v41, %v425_v39  ;;  %v636_v45 = vpop.f32.mrb[21].mxu0  ;;  %v3014_v41 = vlaneseq }
 0x129   : > { %v2232_v47 = vadd.f32 %v636_v45, %v425_v39 }
 0x12a   : > { %v677_v49 = vmax.f32 %v675_v31, %v2230_v42 }
 0x12b   : > { %v698_v51 = vmax.f32 %v696_v33, %v2232_v47  ;;  %v640_v52 = vpop.f32.mrb[22].mxu0 }
 0x12c   : > { %v2236_v55 = vadd.f32 %v640_v52, %v430_v50  ;;  %v642_v58 = vpop.f32.mrb[23].mxu0  ;;  %v2267_v52 = vshrl.u32 %v3014_v41, 7 }
 0x12d   : > { %v2238_v59 = vadd.f32 %v642_v58, %v430_v50 }
 0x12e   : > { %v678_v60 = vmax.f32 %v676_v38, %v2236_v55 }
 0x12f   : > { %v699_v63 = vmax.f32 %v697_v40, %v2238_v59  ;;  %v646_v2 = vpop.f32.mrb[24].mxu0 }
 0x130   : > { %v2242_v3 = vadd.f32 %v646_v2, %v435_v61  ;;  %v648_v4 = vpop.f32.mrb[25].mxu0  ;;  %v2270_v2 = vadd.s32 8, %v2267_v52 }
 0x131   : > { %v2244_v6 = vadd.f32 %v648_v4, %v435_v61  ;;  %v2273_v4 = vadd.s32 16, %v2267_v52 }
 0x132   : > { %v679_v8 = vmax.f32 %v677_v49, %v2242_v3 }
 0x133   : > { %v700_v11 = vmax.f32 %v698_v51, %v2244_v6  ;;  %v652_v12 = vpop.f32.mrb[26].mxu0 }
 0x134   : > { %v2248_v13 = vadd.f32 %v652_v12, %v440_v10  ;;  %v654_v15 = vpop.f32.mrb[27].mxu0  ;;  %v2282_v12 = vadd.s32 40, %v2267_v52 }
 0x135   : > { %v2250_v17 = vadd.f32 %v654_v15, %v440_v10  ;;  %v2285_v15 = vadd.s32 48, %v2267_v52 }
 0x136   : > { %v680_v18 = vmax.f32 %v678_v60, %v2248_v13  ;;  %3038 = vst [vmem:[#allocation13_spill] sm:$0xff] %v2282_v12 }
 0x137   : > { %v701_v20 = vmax.f32 %v699_v63, %v2250_v17  ;;  %v658_v22 = vpop.f32.mrb[28].mxu0  ;;  %3039 = vst [vmem:[#allocation14_spill] sm:$0xff] %v2285_v15 }
 0x138   : > { %v2254_v24 = vadd.f32 %v658_v22, %v445_v19  ;;  %v660_v25 = vpop.f32.mrb[29].mxu0  ;;  %v2294_v22 = vadd.s32 72, %v2267_v52 }
 0x139   : > { %v2256_v26 = vadd.f32 %v660_v25, %v445_v19  ;;  %v2288_v19 = vadd.s32 56, %v2267_v52 }
 0x13a   : > { %v681_v27 = vmax.f32 %v679_v8, %v2254_v24  ;;  %v2276_v8 = vadd.s32 24, %v2267_v52  ;;  %3042 = vst [vmem:[#allocation17_spill] sm:$0xff] %v2294_v22 }
 0x13b   : > { %v702_v31 = vmax.f32 %v700_v11, %v2256_v26  ;;  %v664_v32 = vpop.f32.mrb[30].mxu0  ;;  %v2279_v11 = vadd.s32 32, %v2267_v52  ;;  %3040 = vst [vmem:[#allocation15_spill] sm:$0xff] %v2288_v19 }
 0x13c   : > { %v2260_v33 = vadd.f32 %v664_v32, %v450_v29  ;;  %v666_v34 = vpop.f32.mrb[31].mxu0 }
 0x13d   : > { %v2262_v36 = vadd.f32 %v666_v34, %v450_v29  ;;  %v2300_v29 = vadd.s32 88, %v2267_v52  ;;  %v2308_v34 = vadd.s32 104, %v2267_v52 }
 0x13e   : > { %v682_v38 = vmax.f32 %v680_v18, %v2260_v33 }
 0x13f   : > { %v703_v39 = vmax.f32 %v701_v20, %v2262_v36  ;;  %v2291_v20 = vadd.s32 64, %v2267_v52  ;;  %3044 = vst [vmem:[#allocation19_spill] sm:$0xff] %v2300_v29  ;;  %3046 = vst [vmem:[#allocation21_spill] sm:$0xff] %v2308_v34 }
 0x140   : > { %v683_v40 = vmax.f32 %v681_v27, %v682_v38  ;;  %v2297_v27 = vadd.s32 80, %v2267_v52  ;;  %v2311_v38 = vadd.s32 112, %v2267_v52 }
 0x141   : > { %v704_v45 = vmax.f32 %v702_v31, %v703_v39  ;;  %3041 = vst [vmem:[#allocation16_spill] sm:$0xff] %v2291_v20  ;;  %v2303_v31 = vadd.s32 96, %v2267_v52  ;;  %v2314_v39 = vadd.s32 120, %v2267_v52 }
 0x142   : > { %v684_v49 = vrot.slane %v683_v40, 4  ;;  %3043 = vst [vmem:[#allocation18_spill] sm:$0xff] %v2297_v27  ;;  %3047 = vst [vmem:[#allocation22_spill] sm:$0xff] %v2311_v38 }
 0x143   : > { %v705_v50 = vrot.slane %v704_v45, 4  ;;  %3045 = vst [vmem:[#allocation20_spill] sm:$0xff] %v2303_v31  ;;  %3048 = vst [vmem:[#allocation23_spill] sm:$0xff] %v2314_v39 }
 0x144   : > { %v685_v51 = vmax.f32 %v683_v40, %v684_v49 }
 0x145   : > { %v706_v58 = vmax.f32 %v704_v45, %v705_v50 }
 0x146   : > { %v686_v60 = vrot.slane %v685_v51, 2 }
 0x147   : > { %v707_v61 = vrot.slane %v706_v58, 2 }
 0x148   : > { %v687_v63 = vmax.f32 %v685_v51, %v686_v60 }
 0x149   : > { %v708_v10 = vmax.f32 %v706_v58, %v707_v61 }
 0x14a   : > { %v688_v18 = vrot.slane %v687_v63, 1 }
 0x14b   : > { %v709_v25 = vrot.slane %v708_v10, 1 }
 0x14c   : > { %v2305_v32 = vmax.f32 %v687_v63, %v688_v18 }
 0x14d   : > { %v2316_v40 = vmax.f32 %v708_v10, %v709_v25 }
 0x14e   : > { %vm728_vm2 = vcmp.eq.f32.partialorder %v2170_v43, %v2305_v32  ;;  %vm730_vm3 = vcmp.eq.f32.partialorder %v2182_v53, %v2305_v32  ;;  %vm732_vm4 = vcmp.eq.f32.partialorder %v2172_v44, %v2305_v32  ;;  %vm734_vm5 = vcmp.eq.f32.partialorder %v2184_v54, %v2305_v32 }
 0x14f   : > { %vm736_vm6 = vcmp.eq.f32.partialorder %v2194_v62, %v2305_v32  ;;  %vm738_vm7 = vcmp.eq.f32.partialorder %v2200_v7, %v2305_v32  ;;  %vm740_vm8 = vcmp.eq.f32.partialorder %v2206_v14, %v2305_v32  ;;  %vm742_vm9 = vcmp.eq.f32.partialorder %v2212_v21, %v2305_v32 }
 0x150   : > { %vm744_vm10 = vcmp.eq.f32.partialorder %v2218_v28, %v2305_v32  ;;  %vm746_vm11 = vcmp.eq.f32.partialorder %v2224_v35, %v2305_v32  ;;  %vm748_vm12 = vcmp.eq.f32.partialorder %v2230_v42, %v2305_v32  ;;  %vm750_vm13 = vcmp.eq.f32.partialorder %v2236_v55, %v2305_v32 }
 0x151   : > { %vm752_vm14 = vcmp.eq.f32.partialorder %v2242_v3, %v2305_v32  ;;  %vm754_vm15 = vcmp.eq.f32.partialorder %v2248_v13, %v2305_v32  ;;  %vm756_vm1 = vcmp.eq.f32.partialorder %v2254_v24, %v2305_v32  ;;  %vm758_vm0 = vcmp.eq.f32.partialorder %v2260_v33, %v2305_v32 }
 0x152   : > { %v760_v45 = vsel %vm728_vm2, %v2267_v52, 128  ;;  %v762_v49 = vsel %vm730_vm3, %v2270_v2, 128  ;;  %v764_v50 = vsel %vm732_vm4, %v2273_v4, 128  ;;  %v766_v51 = vsel %vm734_vm5, %v2276_v8, 128 }
 0x153   : > { %v768_v58 = vsel %vm736_vm6, %v2279_v11, 128  ;;  %v770_v60 = vsel %vm738_vm7, %v2282_v12, 128  ;;  %v772_v61 = vsel %vm740_vm8, %v2285_v15, 128  ;;  %v774_v63 = vsel %vm742_vm9, %v2288_v19, 128 }
 0x154   : > { %v776_v10 = vsel %vm744_vm10, %v2291_v20, 128  ;;  %v778_v18 = vsel %vm746_vm11, %v2294_v22, 128  ;;  %v780_v25 = vsel %vm748_vm12, %v2297_v27, 128  ;;  %v782_v0 = vsel %vm750_vm13, %v2300_v29, 128 }
 0x155   : > { %v784_v41 = vsel %vm752_vm14, %v2303_v31, 128  ;;  %v786_v5 = vsel %vm754_vm15, %v2308_v34, 128  ;;  %v788_v27 = vsel %vm756_vm1, %v2311_v38, 128  ;;  %v790_v29 = vsel %vm758_vm0, %v2314_v39, 128 }
 0x156   : > { %vm792_vm2 = vcmp.lt.s32.totalorder %v760_v45, %v764_v50  ;;  %vm794_vm3 = vcmp.lt.s32.totalorder %v762_v49, %v766_v51  ;;  %v890_v31 = vsub.f32 %v2170_v43, %v2305_v32  ;;  %v892_v22 = vsub.f32 %v2182_v53, %v2305_v32 }
 0x157   : > { %v793_v20 = vsel %vm792_vm2, %v760_v45, %v764_v50  ;;  %v795_v34 = vsel %vm794_vm3, %v762_v49, %v766_v51  ;;  %v894_v19 = vsub.f32 %v2172_v44, %v2305_v32  ;;  %v896_v38 = vsub.f32 %v2184_v54, %v2305_v32 }
 0x158   : > { %vm796_vm4 = vcmp.lt.s32.totalorder %v793_v20, %v768_v58  ;;  %vm798_vm5 = vcmp.lt.s32.totalorder %v795_v34, %v770_v60  ;;  %v898_v39 = vsub.f32 %v2194_v62, %v2305_v32  ;;  %v900_v15 = vsub.f32 %v2200_v7, %v2305_v32 }
 0x159   : > { %v797_v43 = vsel %vm796_vm4, %v793_v20, %v768_v58  ;;  %v799_v12 = vsel %vm798_vm5, %v795_v34, %v770_v60  ;;  %v902_v53 = vsub.f32 %v2206_v14, %v2305_v32  ;;  %v904_v45 = vsub.f32 %v2212_v21, %v2305_v32 }
 0x15a   : > { %vm800_vm0 = vcmp.lt.s32.totalorder %v797_v43, %v772_v61  ;;  %vm802_vm6 = vcmp.lt.s32.totalorder %v799_v12, %v774_v63  ;;  %v906_v44 = vsub.f32 %v2218_v28, %v2305_v32  ;;  %v908_v54 = vsub.f32 %v2224_v35, %v2305_v32 }
 0x15b   : > { %v801_v62 = vsel %vm800_vm0, %v797_v43, %v772_v61  ;;  %v803_v49 = vsel %vm802_vm6, %v799_v12, %v774_v63  ;;  %v910_v7 = vsub.f32 %v2230_v42, %v2305_v32  ;;  %v912_v20 = vsub.f32 %v2236_v55, %v2305_v32 }
 0x15c   : > { %vm804_vm7 = vcmp.lt.s32.totalorder %v801_v62, %v776_v10  ;;  %vm806_vm8 = vcmp.lt.s32.totalorder %v803_v49, %v778_v18  ;;  %v914_v14 = vsub.f32 %v2242_v3, %v2305_v32  ;;  %v916_v21 = vsub.f32 %v2248_v13, %v2305_v32 }
 0x15d   : > { %v805_v28 = vsel %vm804_vm7, %v801_v62, %v776_v10  ;;  %v807_v34 = vsel %vm806_vm8, %v803_v49, %v778_v18  ;;  %v918_v35 = vsub.f32 %v2254_v24, %v2305_v32  ;;  %v920_v12 = vsub.f32 %v2260_v33, %v2305_v32 }
 0x15e   : > { %vm808_vm9 = vcmp.lt.s32.totalorder %v805_v28, %v780_v25  ;;  %vm810_vm10 = vcmp.lt.s32.totalorder %v807_v34, %v782_v0  ;;  %v922_v42 = vmul.f32 1.442695, %v890_v31  ;;  %v926_v55 = vmul.f32 1.442695, %v892_v22 }
 0x15f   : > { %v809_v50 = vsel %vm808_vm9, %v805_v28, %v780_v25  ;;  %v811_v51 = vsel %vm810_vm10, %v807_v34, %v782_v0  ;;  %v930_v58 = vmul.f32 1.442695, %v894_v19  ;;  %v934_v60 = vmul.f32 1.442695, %v896_v38 }
 0x160   : > { %vm812_vm11 = vcmp.lt.s32.totalorder %v809_v50, %v784_v41  ;;  %vm814_vm12 = vcmp.lt.s32.totalorder %v811_v51, %v786_v5  ;;  %1678 = vpow2.f32 %v922_v42  ;;  %v938_v3 = vmul.f32 1.442695, %v898_v39 }
 0x161   : > { %v813_v13 = vsel %vm812_vm11, %v809_v50, %v784_v41  ;;  %v815_v61 = vsel %vm814_vm12, %v811_v51, %v786_v5  ;;  %1680 = vpow2.f32 %v926_v55  ;;  %v942_v63 = vmul.f32 1.442695, %v900_v15  ;;  %v3050_v55 = vld [vmem:[#allocation14_spill] sm:$0xff]  ;;  %v3051_v50 = vld [vmem:[#allocation15_spill] sm:$0xff]  ;;  %v3052_v51 = vld [vmem:[#allocation16_spill] sm:$0xff] }
 0x162   : > { %vm816_vm13 = vcmp.lt.s32.totalorder %v813_v13, %v788_v27  ;;  %vm818_vm14 = vcmp.lt.s32.totalorder %v815_v61, %v790_v29  ;;  %1682 = vpow2.f32 %v930_v58  ;;  %v946_v24 = vmul.f32 1.442695, %v902_v53 }
 0x163   : > { %v817_v33 = vsel %vm816_vm13, %v813_v13, %v788_v27  ;;  %v819_v32 = vsel %vm818_vm14, %v815_v61, %v790_v29  ;;  %1684 = vpow2.f32 %v934_v60  ;;  %v950_v22 = vmul.f32 1.442695, %v904_v45  ;;  %v3054_v61 = vld [vmem:[#allocation18_spill] sm:$0xff] }
 0x164   : > { %vm820_vm15 = vcmp.lt.s32.totalorder %v817_v33, %v819_v32  ;;  %1686 = vpow2.f32 %v938_v3  ;;  %v954_v0 = vmul.f32 1.442695, %v906_v44  ;;  %v958_v31 = vmul.f32 1.442695, %v908_v54  ;;  %v3053_v3 = vld [vmem:[#allocation17_spill] sm:$0xff] }
 0x165   : > { %v821_v19 = vsel %vm820_vm15, %v817_v33, %v819_v32  ;;  %1688 = vpow2.f32 %v942_v63  ;;  %v962_v38 = vmul.f32 1.442695, %v910_v7  ;;  %v966_v5 = vmul.f32 1.442695, %v912_v20 }
 0x166   : > { %v822_v39 = vrot.slane %v821_v19, 4  ;;  %1690 = vpow2.f32 %v946_v24  ;;  %v970_v41 = vmul.f32 1.442695, %v914_v14  ;;  %v974_v15 = vmul.f32 1.442695, %v916_v21  ;;  %v3055_v24 = vld [vmem:[#allocation19_spill] sm:$0xff] }
 0x167   : > { %1692 = vpow2.f32 %v950_v22  ;;  %v978_v10 = vmul.f32 1.442695, %v918_v35  ;;  %vm729_vm1 = vcmp.eq.f32.partialorder %v2174_v46, %v2316_v40  ;;  %vm731_vm3 = vcmp.eq.f32.partialorder %v2186_v56, %v2316_v40  ;;  %v3056_v22 = vld [vmem:[#allocation20_spill] sm:$0xff] }
 0x168   : > { %vm823_vm2 = vcmp.lt.s32.totalorder %v821_v19, %v822_v39  ;;  %1694 = vpow2.f32 %v954_v0  ;;  %vm733_vm4 = vcmp.eq.f32.partialorder %v2176_v48, %v2316_v40  ;;  %v982_v27 = vmul.f32 1.442695, %v920_v12  ;;  %v3049_v12 = vld [vmem:[#allocation13_spill] sm:$0xff] }
 0x169   : > { %1696 = vpow2.f32 %v958_v31  ;;  %vm735_vm5 = vcmp.eq.f32.partialorder %v2188_v57, %v2316_v40  ;;  %vm737_vm0 = vcmp.eq.f32.partialorder %v2196_v1, %v2316_v40  ;;  %v2458_v18 = vsel %vm823_vm2, %v821_v19, %v822_v39  ;;  %v3057_v19 = vld [vmem:[#allocation21_spill] sm:$0xff] }
 0x16a   : > { %v2456_v29 = vpop.eup %1678  ;;  %1698 = vpow2.f32 %v962_v38  ;;  %vm739_vm6 = vcmp.eq.f32.partialorder %v2202_v9, %v2316_v40  ;;  %vm741_vm7 = vcmp.eq.f32.partialorder %v2208_v16, %v2316_v40  ;;  %vm743_vm8 = vcmp.eq.f32.partialorder %v2214_v23, %v2316_v40  ;;  %v3058_v38 = vld [vmem:[#allocation22_spill] sm:$0xff] }
 0x16b   : > { %v2464_v25 = vpop.eup %1680  ;;  %1700 = vpow2.f32 %v966_v5  ;;  %vm745_vm9 = vcmp.eq.f32.partialorder %v2220_v30, %v2316_v40  ;;  %vm747_vm10 = vcmp.eq.f32.partialorder %v2226_v37, %v2316_v40  ;;  %vm749_vm11 = vcmp.eq.f32.partialorder %v2232_v47, %v2316_v40  ;;  %v3059_v5 = vld [vmem:[#allocation23_spill] sm:$0xff] }
 0x16c   : > { %v2472_v43 = vpop.eup %1682  ;;  %1702 = vpow2.f32 %v970_v41  ;;  %v986_v53 = vadd.f32 %v2464_v25, %v2456_v29  ;;  %v825_v44 = vrot.slane %v2458_v18, 2  ;;  %vm751_vm12 = vcmp.eq.f32.partialorder %v2238_v59, %v2316_v40 }
 0x16d   : > { %v2478_v45 = vpop.eup %1684  ;;  %1704 = vpow2.f32 %v974_v15  ;;  %vm753_vm13 = vcmp.eq.f32.partialorder %v2244_v6, %v2316_v40  ;;  %vm755_vm14 = vcmp.eq.f32.partialorder %v2250_v17, %v2316_v40  ;;  %vm757_vm15 = vcmp.eq.f32.partialorder %v2256_v26, %v2316_v40 }
 0x16e   : > { %v2485_v54 = vpop.eup %1686  ;;  %1706 = vpow2.f32 %v978_v10  ;;  %v987_v62 = vadd.f32 %v2472_v43, %v986_v53  ;;  %vm759_vm2 = vcmp.eq.f32.partialorder %v2262_v36, %v2316_v40  ;;  %v761_v7 = vsel %vm729_vm1, %v2267_v52, 128 }
 0x16f   : > { %v2492_v49 = vpop.eup %1688  ;;  %1708 = vpow2.f32 %v982_v27  ;;  %v763_v20 = vsel %vm731_vm3, %v2270_v2, 128  ;;  %v765_v28 = vsel %vm733_vm4, %v2273_v4, 128  ;;  %v767_v34 = vsel %vm735_vm5, %v2276_v8, 128 }
 0x170   : > { %v2504_v14 = vpop.eup %1690  ;;  %v988_v21 = vadd.f32 %v2478_v45, %v987_v62  ;;  %v769_v35 = vsel %vm737_vm0, %v2279_v11, 128  ;;  %v771_v42 = vsel %vm739_vm6, %v3049_v12, 128  ;;  %v773_v4 = vsel %vm741_vm7, %v3050_v55, 128 }
 0x171   : > { %v2519_v2 = vpop.eup %1692  ;;  %v775_v8 = vsel %vm743_vm8, %v3051_v50, 128  ;;  %v777_v11 = vsel %vm745_vm9, %v3052_v51, 128  ;;  %v779_v13 = vsel %vm747_vm10, %v3053_v3, 128  ;;  %v781_v63 = vsel %vm749_vm11, %v3054_v61, 128 }
 0x172   : > { %v2537_v58 = vpop.eup %1694  ;;  %v989_v60 = vadd.f32 %v2485_v54, %v988_v21  ;;  %v783_v33 = vsel %vm751_vm12, %v3055_v24, 128  ;;  %v785_v0 = vsel %vm753_vm13, %v3056_v22, 128  ;;  %v787_v31 = vsel %vm755_vm14, %v3057_v19, 128 }
 0x173   : > { %v2552_v32 = vpop.eup %1696  ;;  %v789_v39 = vsel %vm757_vm15, %v3058_v38, 128  ;;  %v791_v41 = vsel %vm759_vm2, %v3059_v5, 128  ;;  %vm831_vm1 = vcmp.lt.s32.totalorder %v761_v7, %v765_v28  ;;  %vm833_vm3 = vcmp.lt.s32.totalorder %v763_v20, %v767_v34 }
 0x174   : > { %v2570_v15 = vpop.eup %1698  ;;  %v990_v10 = vadd.f32 %v2492_v49, %v989_v60  ;;  %v891_v27 = vsub.f32 %v2174_v46, %v2316_v40  ;;  %v832_v62 = vsel %vm831_vm1, %v761_v7, %v765_v28  ;;  %v834_v21 = vsel %vm833_vm3, %v763_v20, %v767_v34 }
 0x175   : > { %v2575_v53 = vpop.eup %1700  ;;  %v893_v12 = vsub.f32 %v2186_v56, %v2316_v40  ;;  %v895_v55 = vsub.f32 %v2176_v48, %v2316_v40  ;;  %vm835_vm4 = vcmp.lt.s32.totalorder %v832_v62, %v769_v35  ;;  %vm837_vm5 = vcmp.lt.s32.totalorder %v834_v21, %v771_v42 }
 0x176   : > { %v2581_v50 = vpop.eup %1702  ;;  %v991_v51 = vadd.f32 %v2504_v14, %v990_v10  ;;  %v897_v60 = vsub.f32 %v2188_v57, %v2316_v40  ;;  %v836_v3 = vsel %vm835_vm4, %v832_v62, %v769_v35  ;;  %v838_v7 = vsel %vm837_vm5, %v834_v21, %v771_v42 }
 0x177   : > { %v2586_v46 = vpop.eup %1704  ;;  %v899_v20 = vsub.f32 %v2196_v1, %v2316_v40  ;;  %v901_v56 = vsub.f32 %v2202_v9, %v2316_v40  ;;  %vm839_vm0 = vcmp.lt.s32.totalorder %v836_v3, %v773_v4  ;;  %vm841_vm6 = vcmp.lt.s32.totalorder %v838_v7, %v775_v8 }
 0x178   : > { %v2592_v48 = vpop.eup %1706  ;;  %v992_v28 = vadd.f32 %v2519_v2, %v991_v51  ;;  %v903_v34 = vsub.f32 %v2208_v16, %v2316_v40  ;;  %v840_v61 = vsel %vm839_vm0, %v836_v3, %v773_v4  ;;  %v842_v35 = vsel %vm841_vm6, %v838_v7, %v775_v8 }
 0x179   : > { %v2597_v57 = vpop.eup %1708  ;;  %v905_v42 = vsub.f32 %v2214_v23, %v2316_v40  ;;  %v907_v1 = vsub.f32 %v2220_v30, %v2316_v40  ;;  %vm843_vm7 = vcmp.lt.s32.totalorder %v840_v61, %v777_v11  ;;  %vm845_vm8 = vcmp.lt.s32.totalorder %v842_v35, %v779_v13 }
 0x17a   : > { %v993_v9 = vadd.f32 %v2537_v58, %v992_v28  ;;  %v909_v24 = vsub.f32 %v2226_v37, %v2316_v40  ;;  %v844_v22 = vsel %vm843_vm7, %v840_v61, %v777_v11  ;;  %v846_v19 = vsel %vm845_vm8, %v842_v35, %v779_v13 }
 0x17b   : > { %v911_v16 = vsub.f32 %v2232_v47, %v2316_v40  ;;  %v913_v4 = vsub.f32 %v2238_v59, %v2316_v40  ;;  %vm847_vm9 = vcmp.lt.s32.totalorder %v844_v22, %v781_v63  ;;  %vm849_vm10 = vcmp.lt.s32.totalorder %v846_v19, %v783_v33 }
 0x17c   : > { %v994_v23 = vadd.f32 %v2552_v32, %v993_v9  ;;  %v915_v8 = vsub.f32 %v2244_v6, %v2316_v40  ;;  %v848_v38 = vsel %vm847_vm9, %v844_v22, %v781_v63  ;;  %v850_v5 = vsel %vm849_vm10, %v846_v19, %v783_v33 }
 0x17d   : > { %v917_v10 = vsub.f32 %v2250_v17, %v2316_v40  ;;  %v919_v11 = vsub.f32 %v2256_v26, %v2316_v40  ;;  %vm851_vm11 = vcmp.lt.s32.totalorder %v848_v38, %v785_v0  ;;  %vm853_vm12 = vcmp.lt.s32.totalorder %v850_v5, %v787_v31 }
 0x17e   : > { %v995_v13 = vadd.f32 %v2570_v15, %v994_v23  ;;  %v921_v62 = vsub.f32 %v2262_v36, %v2316_v40  ;;  %v852_v21 = vsel %vm851_vm11, %v848_v38, %v785_v0  ;;  %v854_v51 = vsel %vm853_vm12, %v850_v5, %v787_v31 }
 0x17f   : > { %v924_v3 = vmul.f32 1.442695, %v891_v27  ;;  %v928_v7 = vmul.f32 1.442695, %v893_v12  ;;  %vm855_vm13 = vcmp.lt.s32.totalorder %v852_v21, %v789_v39  ;;  %vm857_vm14 = vcmp.lt.s32.totalorder %v854_v51, %v791_v41 }
 0x180   : > { %v996_v63 = vadd.f32 %v2575_v53, %v995_v13  ;;  %v932_v33 = vmul.f32 1.442695, %v895_v55  ;;  %vm826_vm15 = vcmp.lt.s32.totalorder %v2458_v18, %v825_v44  ;;  %v856_v28 = vsel %vm855_vm13, %v852_v21, %v789_v39 }
 0x181   : > { %v858_v61 = vsel %vm857_vm14, %v854_v51, %v791_v41  ;;  %1710 = vpow2.f32 %v924_v3  ;;  %v936_v0 = vmul.f32 1.442695, %v897_v60  ;;  %v940_v9 = vmul.f32 1.442695, %v899_v20 }
 0x182   : > { %v997_v35 = vadd.f32 %v2581_v50, %v996_v63  ;;  %vm859_vm2 = vcmp.lt.s32.totalorder %v856_v28, %v858_v61  ;;  %1712 = vpow2.f32 %v928_v7  ;;  %v827_v55 = vsel %vm826_vm15, %v2458_v18, %v825_v44 }
 0x183   : > { %v860_v31 = vsel %vm859_vm2, %v856_v28, %v858_v61  ;;  %1714 = vpow2.f32 %v932_v33  ;;  %v1921_v22 = vmov 1966171168   ;;  %v944_v41 = vmul.f32 1.442695, %v901_v56 }
 0x184   : > { %v998_v27 = vadd.f32 %v2586_v46, %v997_v35  ;;  %v861_v12 = vrot.slane %v860_v31, 4  ;;  %v872_v19 = vunpack.c.l.s4 %v1921_v22  ;;  %1716 = vpow2.f32 %v936_v0 }
 0x185   : > { %1718 = vpow2.f32 %v940_v9  ;;  %v948_v5 = vmul.f32 1.442695, %v903_v34  ;;  %v828_v13 = vrot.slane %v827_v55, 1  ;;  %v952_v18 = vmul.f32 1.442695, %v905_v42 }
 0x186   : > { %v999_v39 = vadd.f32 %v2592_v48, %v998_v27  ;;  %vm862_vm1 = vcmp.lt.s32.totalorder %v860_v31, %v861_v12  ;;  %v873_v20 = vunpack.c.0.s8 %v872_v19  ;;  %1720 = vpow2.f32 %v944_v41 }
 0x187   : > { %v863_v23 = vsel %vm862_vm1, %v860_v31, %v861_v12  ;;  %vm829_vm4 = vcmp.lt.s32.totalorder %v827_v55, %v828_v13  ;;  %1722 = vpow2.f32 %v948_v5  ;;  %v956_v7 = vmul.f32 1.442695, %v907_v1 }
 0x188   : > { %v1000_v60 = vadd.f32 %v2597_v57, %v999_v39  ;;  %v864_v38 = vrot.slane %v863_v23, 2  ;;  %v830_v42 = vsel %vm829_vm4, %v827_v55, %v828_v13  ;;  %v876_v33 = vsub.s32 %v873_v20, %v2267_v52 }
 0x189   : > { %1724 = vpow2.f32 %v952_v18  ;;  %v960_v35 = vmul.f32 1.442695, %v909_v24  ;;  %v964_v52 = vmul.f32 1.442695, %v911_v16  ;;  %v968_v12 = vmul.f32 1.442695, %v913_v4 }
 0x18a   : > { %v1001_v21 = vrot.slane %v1000_v60, 4  ;;  %vm865_vm3 = vcmp.lt.s32.totalorder %v863_v23, %v864_v38  ;;  %1726 = vpow2.f32 %v956_v7  ;;  %v3060_v19 = vlaneseq }
 0x18b   : > { %v2631_v44 = vpop.eup %1710  ;;  %v866_v51 = vsel %vm865_vm3, %v863_v23, %v864_v38  ;;  %1728 = vpow2.f32 %v960_v35  ;;  %v972_v59 = vmul.f32 1.442695, %v915_v8  ;;  %v976_v23 = vmul.f32 1.442695, %v917_v10 }
 0x18c   : > { %v2633_v3 = vpop.eup %1712  ;;  %v1002_v56 = vadd.f32 %v1001_v21, %v1000_v60  ;;  %v867_v34 = vrot.slane %v866_v51, 1  ;;  %vm887_vm0 = vcmp.lt.s32.totalorder %v3060_v19, 256  ;;  %1730 = vpow2.f32 %v964_v52 }
 0x18d   : > { %v1007_v63 = vadd.f32 %v2633_v3, %v2631_v44  ;;  %v2644_v28 = vpop.eup %1714  ;;  %1732 = vpow2.f32 %v968_v12  ;;  %v980_v6 = vmul.f32 1.442695, %v919_v11  ;;  %v984_v17 = vmul.f32 1.442695, %v921_v62 }
 0x18e   : > { %v1003_v61 = vrot.slane %v1002_v56, 2  ;;  %vm868_vm5 = vcmp.lt.s32.totalorder %v866_v51, %v867_v34  ;;  %v2650_v0 = vpop.eup %1716  ;;  %vm3063_vm6 = vcmask 1043456  }
 0x18f   : > { %v1008_v30 = vadd.f32 %v2644_v28, %v1007_v63  ;;  %v869_v1 = vsel %vm868_vm5, %v866_v51, %v867_v34  ;;  %v2660_v24 = vpop.eup %1718  ;;  %vm3064_vm7 = vmmov %vm3063_vm6 }
 0x190   : > { %v1004_v31 = vadd.f32 %v1003_v61, %v1002_v56  ;;  %v870_v27 = vcombine.low %v830_v42, %v869_v1  ;;  %v2664_v39 = vpop.eup %1720 }
 0x191   : > { %v1009_v37 = vadd.f32 %v2650_v0, %v1008_v30  ;;  %v2670_v41 = vpop.eup %1722 }
 0x192   : > { %v1005_v9 = vrot.slane %v1004_v31, 1  ;;  %v877_v55 = vrot.slane %v870_v27, %v876_v33 }
 0x193   : > { %v1010_v22 = vadd.f32 %v2660_v24, %v1009_v37  ;;  %v2679_v38 = vpop.eup %1724 }
 0x194   : > { %v1006_v47 = vadd.f32 %v1005_v9, %v1004_v31  ;;  %v884_v16 = vrot.slane %v877_v55, %v876_v33  ;;  %v2685_v5 = vpop.eup %1726 }
 0x195   : > { %v1011_v4 = vadd.f32 %v2664_v39, %v1010_v22  ;;  %v2691_v13 = vpop.eup %1728 }
 0x196   : > { %1734 = vrcp.f32 %v1006_v47  ;;  %889 = vst.msk [vmem:[%s2675_s15] sm:$0x3] %vm887_vm0, %v884_v16  ;;  %v2694_v21 = vpop.eup %1730 }
 0x197   : > { %v1012_v60 = vadd.f32 %v2670_v41, %v1011_v4  ;;  %1736 = vpow2.f32 %v972_v59  ;;  %v2696_v26 = vpop.eup %1732 }
 0x198   : > { %1738 = vpow2.f32 %v976_v23 }
 0x199   : > { %v1013_v8 = vadd.f32 %v2679_v38, %v1012_v60  ;;  %1740 = vpow2.f32 %v980_v6 }
 0x19a   : > { %1742 = vpow2.f32 %v984_v17 }
 0x19b   : > { %v1014_v10 = vadd.f32 %v2685_v5, %v1013_v8 }
 0x19d   : > { %v1015_v20 = vadd.f32 %v2691_v13, %v1014_v10 }
 0x19f   : > { %v1016_v11 = vadd.f32 %v2694_v21, %v1015_v20 }
 0x1a0   : > { %v1735_v18 = vpop.eup %1734 }
 0x1a1   : > { %v1017_v51 = vadd.f32 %v2696_v26, %v1016_v11  ;;  %v1034_v36 = vmul.f32 %v1735_v18, %v2464_v25  ;;  %v1032_v40 = vmul.f32 %v1735_v18, %v2456_v29  ;;  %v2703_v62 = vmul.f32 %v1735_v18, %v2485_v54  ;;  %v2705_v56 = vpop.eup %1736 }
 0x1a2   : > { %v2708_v7 = vmul.f32 %v1735_v18, %v2472_v43  ;;  %v2711_v34 = vmul.f32 %v1735_v18, %v2478_v45  ;;  %v2714_v63 = vmul.f32 %v1735_v18, %v2504_v14  ;;  %v2717_v42 = vmul.f32 %v1735_v18, %v2492_v49  ;;  %v1739_v43 = vpop.eup %1738 }
 0x1a3   : > { %v1018_v25 = vadd.f32 %v2705_v56, %v1017_v51  ;;  %v1569_v29 = vpack.c.bf16 %v1034_v36, %v1032_v40  ;;  %v2721_v54 = vmul.f32 %v1735_v18, %v2537_v58  ;;  %v2724_v33 = vmul.f32 %v1735_v18, %v2519_v2  ;;  %v1741_v1 = vpop.eup %1740 }
 0x1a4   : > { %v1573_v45 = vpack.c.bf16 %v2711_v34, %v2708_v7  ;;  %v1577_v14 = vpack.c.bf16 %v2717_v42, %v2703_v62  ;;  %v2731_v61 = vmul.f32 %v1735_v18, %v2570_v15  ;;  %v2734_v49 = vmul.f32 %v1735_v18, %v2552_v32  ;;  %v1743_v12 = vpop.eup %1742 }
 0x1a5   : > { %v1019_v35 = vadd.f32 %v1739_v43, %v1018_v25  ;;  %v1581_v58 = vpack.c.bf16 %v2724_v33, %v2714_v63  ;;  %v2739_v2 = vmul.f32 %v1735_v18, %v2581_v50  ;;  %v2742_v30 = vmul.f32 %v1735_v18, %v2575_v53 }
 0x1a6   : > { %v1585_v31 = vpack.c.bf16 %v2734_v49, %v2721_v54  ;;  %v2747_v15 = vmul.f32 %v1735_v18, %v2592_v48  ;;  %v2750_v32 = vmul.f32 %v1735_v18, %v2586_v46  ;;  %v2753_v52 = vmul.f32 %v1735_v18, %v2597_v57 }
 0x1a7   : > { %v1020_v27 = vadd.f32 %v1741_v1, %v1019_v35  ;;  %v1589_v50 = vpack.c.bf16 %v2742_v30, %v2731_v61 }
 0x1a8   : > { %v1593_v53 = vpack.c.bf16 %v2750_v32, %v2739_v2  ;;  %v1597_v37 = vpack.c.bf16 %v2753_v52, %v2747_v15 }
 0x1a9   : > { %v1021_v9 = vadd.f32 %v1743_v12, %v1020_v27 }
 0x1ab   : > { %v1022_v48 = vrot.slane %v1021_v9, 4 }
 0x1ad   : > { %v1023_v55 = vadd.f32 %v1022_v48, %v1021_v9 }
 0x1af   : > { %v1024_v22 = vrot.slane %v1023_v55, 2 }
 0x1b1   : > { %v1025_v46 = vadd.f32 %v1024_v22, %v1023_v55 }
 0x1b3   : > { %v1026_v19 = vrot.slane %v1025_v46, 1 }
 0x1b5   : > { %v1027_v47 = vadd.f32 %v1026_v19, %v1025_v46 }
 0x1b7   : > { %1744 = vrcp.f32 %v1027_v47 }
 0x1c1   : > { %v1745_v57 = vpop.eup %1744 }
 0x1c2   : > { %v1033_v59 = vmul.f32 %v1745_v57, %v2631_v44  ;;  %v1035_v16 = vmul.f32 %v1745_v57, %v2633_v3  ;;  %v1037_v4 = vmul.f32 %v1745_v57, %v2644_v28  ;;  %v1039_v23 = vmul.f32 %v1745_v57, %v2650_v0 }
 0x1c3   : > { %v1041_v60 = vmul.f32 %v1745_v57, %v2660_v24  ;;  %v1043_v6 = vmul.f32 %v1745_v57, %v2664_v39  ;;  %v1045_v8 = vmul.f32 %v1745_v57, %v2670_v41  ;;  %v1047_v17 = vmul.f32 %v1745_v57, %v2679_v38 }
 0x1c4   : > { %v1567_v10 = vpack.c.bf16 %v1035_v16, %v1033_v59  ;;  %v1183_v20 = vadd.f32 %v1035_v16, %v1034_v36  ;;  %v1180_v11 = vadd.f32 %v1033_v59, %v1032_v40  ;;  %v1571_v18 = vpack.c.bf16 %v1039_v23, %v1037_v4 }
 0x1c5   : > { %v1192_v44 = vadd.f32 %v1041_v60, %v2703_v62  ;;  %v1186_v3 = vadd.f32 %v1037_v4, %v2708_v7  ;;  %v1575_v51 = vpack.c.bf16 %v1043_v6, %v1041_v60  ;;  %v1198_v28 = vadd.f32 %v1045_v8, %v2714_v63  ;;  %v355_v62 = vld [vmem:[%s3061_s2] sm:$0xf]  ;;  %s1751_s2 = sshll.u32 %s1922_s30, 4  ;;  %s1752_s2 = int_to_ptr.vmem [resolvable:$false] %s1751_s2 }
 0x1c6   : > { %1568 = vmatprep.subr.bf16.mxu1 %v1567_v10  ;;  %1184 = vadd.xlane.f32.xlu1 %v1183_v20  ;;  %v1189_v0 = vadd.f32 %v1039_v23, %v2711_v34  ;;  %v1579_v24 = vpack.c.bf16 %v1047_v17, %v1045_v8  ;;  %v1049_v39 = vmul.f32 %v1745_v57, %v2685_v5  ;;  %s1753_s3 = scalar_lea.vmem %s1752_s2, 64  ;;  %p1754_p1 = scmp.lt.s32.totalorder %s2855_s21, %s1752_s2 }
 0x1c7   : > { %1181 = vadd.xlane.f32.xlu0 %v1180_v11  ;;  %1570 = vmatpush1.bf16.msra.mxu1 %v1569_v29  ;;  %v1195_v41 = vadd.f32 %v1043_v6, %v2717_v42  ;;  %v1051_v38 = vmul.f32 %v1745_v57, %v2691_v13  ;;  %v1053_v36 = vmul.f32 %v1745_v57, %v2694_v21  ;;  %p1755_p2 = scmp.lt.s32.totalorder %s1753_s3, %s1747_s1 }
 0x1c8   : > { %1572 = vmatprep.subr.bf16.mxu1 %v1571_v18  ;;  %v1204_v40 = vadd.f32 %v1049_v39, %v2721_v54  ;;  %v1201_v25 = vadd.f32 %v1047_v17, %v2724_v33  ;;  %v1055_v35 = vmul.f32 %v1745_v57, %v2696_v26  ;;  %v1057_v27 = vmul.f32 %v1745_v57, %v2705_v56 }
 0x1c9   : > { %v1583_v9 = vpack.c.bf16 %v1051_v38, %v1049_v39  ;;  %v1210_v5 = vadd.f32 %v1053_v36, %v2731_v61  ;;  %v1207_v29 = vadd.f32 %v1051_v38, %v2734_v49  ;;  %v1059_v48 = vmul.f32 %v1745_v57, %v1739_v43  ;;  %p1756_p3 = por %p1755_p2, %p1754_p1 }
 0x1ca   : > { %1193 = vadd.xlane.f32.xlu1 %v1192_v44  ;;  %v1587_v55 = vpack.c.bf16 %v1055_v35, %v1053_v36  ;;  %v1216_v13 = vadd.f32 %v1057_v27, %v2739_v2  ;;  %v1061_v21 = vmul.f32 %v1745_v57, %v1741_v1  ;;  %v1213_v22 = vadd.f32 %v1055_v35, %v2742_v30 }
 0x1cb   : > { %1187 = vadd.xlane.f32.xlu0 %v1186_v3  ;;  %1574 = vmatpush1.bf16.msra.mxu1 %v1573_v45  ;;  %v1591_v26 = vpack.c.bf16 %v1059_v48, %v1057_v27  ;;  %v1063_v56 = vmul.f32 %v1745_v57, %v1743_v12  ;;  %v1219_v46 = vadd.f32 %v1059_v48, %v2750_v32  ;;  %p1757_p5 = pnand %p1756_p3, %p1750_p0 }
 0x1cc   : > { %1576 = vmatprep.subr.bf16.mxu1 %v1575_v51  ;;  %v1222_v19 = vadd.f32 %v1061_v21, %v2747_v15 }
 0x1cd   : > { %v1595_v43 = vpack.c.bf16 %v1063_v56, %v1061_v21  ;;  %v1225_v47 = vadd.f32 %v1063_v56, %v2753_v52  ;;  %v1746_v52 = vld [vmem:[%s2035_s19] sm:$0xff]  ;;  %s2840_s19 = scalar_lea.vmem [#allocation7], %s2641_s10 }
 0x1ce   : > { %1199 = vadd.xlane.f32.xlu1 %v1198_v28 }
 0x1cf   : > { %1190 = vadd.xlane.f32.xlu0 %v1189_v0  ;;  %1578 = vmatpush1.bf16.msra.mxu1 %v1577_v14 }
 0x1d0   : > { %1580 = vmatprep.subr.bf16.mxu1 %v1579_v24  ;;  %v3065_v24 = vmov 0.0  }
 0x1d1   : > { %1179 = vst [vmem:[%s2840_s19] sm:$0x1] %v3065_v24 }
 0x1d2   : > { %1205 = vadd.xlane.f32.xlu1 %v1204_v40 }
 0x1d3   : > { %1196 = vadd.xlane.f32.xlu0 %v1195_v41  ;;  %1582 = vmatpush1.bf16.msra.mxu1 %v1581_v58 }
 0x1d4   : > { %1584 = vmatprep.subr.bf16.mxu1 %v1583_v9 }
 0x1d6   : > { %1211 = vadd.xlane.f32.xlu1 %v1210_v5 }
 0x1d7   : > { %1202 = vadd.xlane.f32.xlu0 %v1201_v25  ;;  %1586 = vmatpush1.bf16.msra.mxu1 %v1585_v31 }
 0x1d8   : > { %1588 = vmatprep.subr.bf16.mxu1 %v1587_v55 }
 0x1da   : > { %1217 = vadd.xlane.f32.xlu1 %v1216_v13 }
 0x1db   : > { %1208 = vadd.xlane.f32.xlu0 %v1207_v29  ;;  %1590 = vmatpush1.bf16.msra.mxu1 %v1589_v50 }
 0x1dc   : > { %1592 = vmatprep.subr.bf16.mxu1 %v1591_v26 }
 0x1de   : > { %1223 = vadd.xlane.f32.xlu1 %v1222_v19 }
 0x1df   : > { %1214 = vadd.xlane.f32.xlu0 %v1213_v22  ;;  %1594 = vmatpush1.bf16.msra.mxu1 %v1593_v53 }
 0x1e0   : > { %1596 = vmatprep.subr.bf16.mxu1 %v1595_v43 }
 0x1e3   : > { %1220 = vadd.xlane.f32.xlu0 %v1219_v46  ;;  %1598 = vmatpush1.bf16.msra.mxu1 %v1597_v37  ;;  %v3062_v37 = vld [vmem:[#allocation12_spill] sm:$0xff] }
 0x1e6   : > { %1129 = vmatmul.mubr.f32.vlgmr.msra.gmra.mrb[0].mxu1 %v355_v62 }
 0x1e7   : > { %1226 = vadd.xlane.f32.xlu0 %v1225_v47 }
 0x253   : > { %v1185_v7 = vpop.xlane.xlu1 %1184 }
 0x254   : > { %v1182_v34 = vpop.xlane.xlu0 %1181  ;;  %1264 = vst [vmem:[%s2813_s20 + $0x8] sm:$0xff] %v1185_v7 }
 0x255   : > { %1263 = vst [vmem:[%s2813_s20] sm:$0xff] %v1182_v34 }
 0x257   : > { %v1194_v63 = vpop.xlane.xlu1 %1193 }
 0x258   : > { %v1188_v42 = vpop.xlane.xlu0 %1187  ;;  %1267 = vst [vmem:[%s2813_s20 + $0x20] sm:$0xff] %v1194_v63 }
 0x259   : > { %1265 = vst [vmem:[%s2813_s20 + $0x10] sm:$0xff] %v1188_v42 }
 0x25b   : > { %v1200_v54 = vpop.xlane.xlu1 %1199 }
 0x25c   : > { %v1191_v33 = vpop.xlane.xlu0 %1190  ;;  %1269 = vst [vmem:[%s2813_s20 + $0x30] sm:$0xff] %v1200_v54 }
 0x25d   : > { %1266 = vst [vmem:[%s2813_s20 + $0x18] sm:$0xff] %v1191_v33 }
 0x25f   : > { %v1206_v45 = vpop.xlane.xlu1 %1205 }
 0x260   : > { %v1197_v14 = vpop.xlane.xlu0 %1196  ;;  %1271 = vst [vmem:[%s2813_s20 + $0x40] sm:$0xff] %v1206_v45 }
 0x261   : > { %1268 = vst [vmem:[%s2813_s20 + $0x28] sm:$0xff] %v1197_v14 }
 0x263   : > { %v1212_v61 = vpop.xlane.xlu1 %1211 }
 0x264   : > { %v1203_v49 = vpop.xlane.xlu0 %1202  ;;  %1273 = vst [vmem:[%s2813_s20 + $0x50] sm:$0xff] %v1212_v61 }
 0x265   : > { %1270 = vst [vmem:[%s2813_s20 + $0x38] sm:$0xff] %v1203_v49 }
 0x267   : > { %v1218_v58 = vpop.xlane.xlu1 %1217 }
 0x268   : > { %v1209_v2 = vpop.xlane.xlu0 %1208  ;;  %1275 = vst [vmem:[%s2813_s20 + $0x60] sm:$0xff] %v1218_v58 }
 0x269   : > { %1272 = vst [vmem:[%s2813_s20 + $0x48] sm:$0xff] %v1209_v2 }
 0x26b   : > { %v1224_v30 = vpop.xlane.xlu1 %1223 }
 0x26c   : > { %v1215_v1 = vpop.xlane.xlu0 %1214  ;;  %1277 = vst [vmem:[%s2813_s20 + $0x70] sm:$0xff] %v1224_v30 }
 0x26d   : > { %1274 = vst [vmem:[%s2813_s20 + $0x58] sm:$0xff] %v1215_v1 }
 0x270   : > { %v1221_v31 = vpop.xlane.xlu0 %1220 }
 0x271   : > { %1276 = vst [vmem:[%s2813_s20 + $0x68] sm:$0xff] %v1221_v31 }
 0x274   : > { %v1227_v15 = vpop.xlane.xlu0 %1226 }
 0x275   : > { %1278 = vst [vmem:[%s2813_s20 + $0x78] sm:$0xff] %v1227_v15 }
 0x2b9   : > { %v1130_v32 = vpop.f32.mrb[0].mxu1 }
 0x2ba   : > { %v1141_v50 = vsub.f32 %v1130_v32, %v1746_v52  ;;  %v1132_v12 = vpop.f32.mrb[1].mxu1 }
 0x2bb   : > { %v1137_v53 = vcombine.low %v1130_v32, %v1132_v12  ;;  %v1142_v57 = vsub.f32 %v1132_v12, %v3062_v37 }
 0x2bc   : > { %v1143_v59 = vmul.f32 %v1141_v50, %v1141_v50 }
 0x2bd   : > { %1139 = vst [vmem:[%s2834_s22] sm:$0xff] %v1137_v53  ;;  %v1144_v16 = vmul.f32 %v1142_v57, %v1142_v57 }
 0x2be   : > { %v1145_v4 = vsel %vm3063_vm6, %v1143_v59, 0.0 }
 0x2bf   : > { %v1146_v23 = vrot.slane %v1145_v4, 4  ;;  %v1152_v60 = vsel %vm3064_vm7, %v1144_v16, 0.0 }
 0x2c0   : > { %v1153_v6 = vrot.slane %v1152_v60, 4 }
 0x2c1   : > { %v1147_v8 = vadd.f32 %v1146_v23, %v1145_v4 }
 0x2c2   : > { %v1154_v17 = vadd.f32 %v1153_v6, %v1152_v60 }
 0x2c3   : > { %v1148_v10 = vrot.slane %v1147_v8, 2 }
 0x2c4   : > { %v1155_v20 = vrot.slane %v1154_v17, 2 }
 0x2c5   : > { %v1149_v11 = vadd.f32 %v1148_v10, %v1147_v8 }
 0x2c6   : > { %v1156_v18 = vadd.f32 %v1155_v20, %v1154_v17 }
 0x2c7   : > { %v1150_v44 = vrot.slane %v1149_v11, 1 }
 0x2c8   : > { %v1157_v3 = vrot.slane %v1156_v18, 1 }
 0x2c9   : > { %v1151_v51 = vadd.f32 %v1150_v44, %v1149_v11 }
 0x2ca   : > { %v1158_v28 = vadd.f32 %v1157_v3, %v1156_v18 }
 0x2cc   : > { %v1228_v0 = vadd.f32 %v1158_v28, %v1151_v51 }
 0x2ce   : > { %1229 = vadd.xlane.f32.xlu1 %v1228_v0 }
 0x2cf   : > { %1760 = shalt.err (!%p1757_p5)
}
 0x2d0   : > { %s1761_s15 = scalar_lea.hbm %s2852_s18, 32  ;;  %s1765_s17 = scalar_lea.hbm %s3009_s5, 64 }
 0x2d1   : > { %p1762_p6 = scmp.ne.s32.totalorder %s2852_s18, %s1761_s15  ;;  %p1766_p10 = scmp.lt.u32.totalorder %s2852_s18, %s3009_s5 }
 0x2d2   : > { %p1767_p11 = scmp.lt.u32.totalorder %s1765_s17, %s1761_s15  ;;  %p1769_p13 = scmp.lt.u32.totalorder %s1761_s15, %s2852_s18 }
 0x2d3   : > { %p1763_p7 = pnand %p1762_p6, %p2011_p4 }
 0x2d4   : > { %p1768_p12 = por %p1767_p11, %p1766_p10 }
 0x2d5   : > { %p1764_p9 = pneg %p1763_p7 }
 0x2d6   : > { %p1770_p0 = por %p1769_p13, %p1768_p12 }
 0x2d8   : > { %p1771_p1 = pnand %p1770_p0, %p1764_p9 }
 0x2da   : > { %1774 = shalt.err (!%p1771_p1)
}
 0x2db   : > { %1600 = dma.vmem_to_hbm [thread:$0]  (%p2011_p4), %s2855_s21, 32, %s2852_s18, %s1288_s0  }
 0x2dc   : > { %s2887_s15 = scalar_lea.hbm %s3008_s4, %s1565_s8  ;;  %s1313_s12 = sshll.u32 %s2834_s22, 4  ;;  %s2890_s12 = int_to_ptr.vmem [resolvable:$true] %s1313_s12 }
 0x2dd   : > { %s2897_s30 = scalar_lea.hbm %s3010_s6, %s1565_s8  ;;  %s1283_s2 = scalar_lea.sflag [#allocation3], %s2641_s10 }
 0x2de   : > { %s1775_s18 = scalar_lea.vmem %s2890_s12, 128  ;;  %s1923_s21 = smov [#allocation2]  }
 0x2df   : > { %p1776_p2 = scmp.ne.s32.totalorder %s2890_s12, %s1775_s18  ;;  %s1779_s1 = sshll.u32 %s1923_s21, 4  ;;  %s1780_s1 = int_to_ptr.vmem [resolvable:$false] %s1779_s1 }
 0x2e0   : > { %s1781_s22 = scalar_lea.vmem %s1780_s1, 256  ;;  %p1782_p6 = scmp.lt.s32.totalorder %s2890_s12, %s1780_s1 }
 0x2e1   : > { %p1777_p3 = pnand %p1776_p2, %p2011_p4  ;;  %p1783_p7 = scmp.lt.s32.totalorder %s1781_s22, %s1775_s18 }
 0x2e3   : > { %p1778_p5 = pneg %p1777_p3  ;;  %p1784_p9 = por %p1783_p7, %p1782_p6 }
 0x2e5   : > { %p1785_p10 = pnand %p1784_p9, %p1778_p5 }
 0x2e7   : > { %1788 = shalt.err (!%p1785_p10)
}
 0x2e8   : > { %s1789_s8 = scalar_lea.hbm %s2887_s15, 128  ;;  %s1793_s17 = scalar_lea.hbm %s3008_s4, 256 }
 0x2e9   : > { %p1790_p11 = scmp.ne.s32.totalorder %s2887_s15, %s1789_s8  ;;  %p1794_p0 = scmp.lt.u32.totalorder %s2887_s15, %s3008_s4 }
 0x2ea   : > { %p1795_p1 = scmp.lt.u32.totalorder %s1793_s17, %s1789_s8  ;;  %p1797_p3 = scmp.lt.u32.totalorder %s1789_s8, %s2887_s15 }
 0x2eb   : > { %p1791_p12 = pnand %p1790_p11, %p2011_p4 }
 0x2ec   : > { %p1796_p2 = por %p1795_p1, %p1794_p0 }
 0x2ed   : > { %p1792_p13 = pneg %p1791_p12 }
 0x2ee   : > { %p1798_p5 = por %p1797_p3, %p1796_p2 }
 0x2f0   : > { %p1799_p6 = pnand %p1798_p5, %p1792_p13 }
 0x2f2   : > { %1802 = shalt.err (!%p1799_p6)
}
 0x2f3   : > { %1599 = dma.vmem_to_hbm [thread:$0]  (%p2011_p4), %s2890_s12, 128, %s2887_s15, %s1283_s2  }
 0x2f4   : > { %s1341_s18 = sshll.u32 %s2813_s20, 4  ;;  %s1924_s8 = smov [#allocation6]   ;;  %s2922_s18 = int_to_ptr.vmem [resolvable:$true] %s1341_s18 }
 0x2f5   : > { %s1803_s22 = scalar_lea.vmem %s2922_s18, 2048  ;;  %s1807_s3 = sshll.u32 %s1924_s8, 4  ;;  %s1808_s3 = int_to_ptr.vmem [resolvable:$false] %s1807_s3 }
 0x2f6   : > { %p1804_p7 = scmp.ne.s32.totalorder %s2922_s18, %s1803_s22  ;;  %s1809_s16 = scalar_lea.vmem %s1808_s3, 4096 }
 0x2f7   : > { %p1810_p11 = scmp.lt.s32.totalorder %s2922_s18, %s1808_s3  ;;  %p1811_p12 = scmp.lt.s32.totalorder %s1809_s16, %s1803_s22 }
 0x2f8   : > { %p1805_p9 = pnand %p1804_p7, %p2011_p4 }
 0x2f9   : > { %p1812_p13 = por %p1811_p12, %p1810_p11 }
 0x2fa   : > { %p1806_p10 = pneg %p1805_p9 }
 0x2fc   : > { %p1813_p0 = pnand %p1812_p13, %p1806_p10 }
 0x2fe   : > { %1816 = shalt.err (!%p1813_p0)
}
 0x2ff   : > { %s1817_s20 = scalar_lea.hbm %s2897_s30, 2048  ;;  %s1821_s2 = scalar_lea.hbm %s3010_s6, 4096 }
 0x300   : > { %p1818_p1 = scmp.ne.s32.totalorder %s2897_s30, %s1817_s20  ;;  %p1822_p5 = scmp.lt.u32.totalorder %s2897_s30, %s3010_s6 }
 0x301   : > { %p1823_p6 = scmp.lt.u32.totalorder %s1821_s2, %s1817_s20  ;;  %p1825_p9 = scmp.lt.u32.totalorder %s1817_s20, %s2897_s30 }
 0x302   : > { %p1819_p2 = pnand %p1818_p1, %p2011_p4 }
 0x303   : > { %p1824_p7 = por %p1823_p6, %p1822_p5 }
 0x304   : > { %p1820_p3 = pneg %p1819_p2 }
 0x305   : > { %p1826_p10 = por %p1825_p9, %p1824_p7 }
 0x307   : > { %p1827_p11 = pnand %p1826_p10, %p1820_p3 }
 0x309   : > { %1830 = shalt.err (!%p1827_p11)
}
 0x30a   : > { %s1925_s1 = smov 128   ;;  %s1926_s22 = smov 256   ;;  %v1279_v39 = vld [vmem:[%s2840_s19] sm:$0x1] }
 0x30b   : > { %s1927_s8 = smov 8   ;;  %s1561_s3 = sshll.u32 %s1909_s27, 4 }
 0x30c   : > { %1601 = dma.vmem_to_hbm [thread:$0]  (%p2011_p4), %s2922_s18, 2048, %s2897_s30, %s1288_s0, %s1925_s1, %s1926_s22, %s1927_s8  }
 0x30d   : > { %s1357_s16 = sshll.u32 %s2840_s19, 4  ;;  %s2953_s12 = scalar_lea.hbm %s3011_s7, %s1561_s3  ;;  %s2955_s16 = int_to_ptr.vmem [resolvable:$true] %s1357_s16 }
 0x30e   : > { %s1298_s2 = scalar_lea.sflag [#allocation8], %s2641_s10  ;;  %s1831_s17 = scalar_lea.vmem %s2955_s16, 16 }
 0x30f   : > { %p1832_p12 = scmp.ne.s32.totalorder %s2955_s16, %s1831_s17  ;;  %s1928_s0 = smov [#allocation7]  }
 0x310   : > { %s1835_s27 = sshll.u32 %s1928_s0, 4  ;;  %s1836_s27 = int_to_ptr.vmem [resolvable:$false] %s1835_s27 }
 0x311   : > { %p1833_p13 = pnand %p1832_p12, %p2011_p4  ;;  %s1837_s23 = scalar_lea.vmem %s1836_s27, 32 }
 0x312   : > { %p1838_p1 = scmp.lt.s32.totalorder %s2955_s16, %s1836_s27  ;;  %p1839_p2 = scmp.lt.s32.totalorder %s1837_s23, %s1831_s17 }
 0x313   : > { %p1834_p0 = pneg %p1833_p13 }
 0x314   : > { %p1840_p3 = por %p1839_p2, %p1838_p1 }
 0x316   : > { %p1841_p5 = pnand %p1840_p3, %p1834_p0 }
 0x35b   : > { %v1230_v41 = vpop.xlane.xlu1 %1229 }
 0x35c   : > { %v1280_v38 = vadd.f32 %v1279_v39, %v1230_v41 }
 0x35e   : > { %1281 = vst [vmem:[%s2840_s19] sm:$0x1] %v1280_v38 }
 0x35f   : > { %1844 = shalt.err (!%p1841_p5)
}
 0x360   : > { %s1845_s10 = scalar_lea.hbm %s2953_s12, 16  ;;  %s1849_s18 = scalar_lea.hbm %s3011_s7, 32 }
 0x361   : > { %p1846_p6 = scmp.ne.s32.totalorder %s2953_s12, %s1845_s10  ;;  %p1850_p10 = scmp.lt.u32.totalorder %s2953_s12, %s3011_s7 }
 0x362   : > { %p1851_p11 = scmp.lt.u32.totalorder %s1849_s18, %s1845_s10  ;;  %p1853_p13 = scmp.lt.u32.totalorder %s1845_s10, %s2953_s12 }
 0x363   : > { %p1847_p7 = pnand %p1846_p6, %p2011_p4 }
 0x364   : > { %p1852_p12 = por %p1851_p11, %p1850_p10 }
 0x365   : > { %p1848_p9 = pneg %p1847_p7 }
 0x366   : > { %p1854_p0 = por %p1853_p13, %p1852_p12 }
 0x368   : > { %p1855_p1 = pnand %p1854_p0, %p1848_p9 }
 0x36a   : > { %1858 = shalt.err (!%p1855_p1)
}
 0x36b   : > { %1602 = dma.vmem_to_hbm [thread:$0]  (%p2011_p4), %s2955_s16, 16, %s2953_s12, %s1298_s2  }
 0x36c PF: > { %p1620_p2 = scmp.ge.s32.totalorder %s1917_s29, 2  ;;  %s1369_s22 = sand.u32 1, %s1897_s24  }
 0x36d   : > { %s1370_s8 = scalar_lea.sflag [#allocation3], %s1369_s22 }
 0x36e   : > { %p1608_p3 = pnand %p1620_p2, %p2020_p8 }
 0x370   : > { %1884 = dma.done.wait (!%p1608_p3), %s1370_s8, 128  }
 0x371   : > { %1886 = vsyncadd (!%p1608_p3), %s1370_s8, 4294967168  ;;  %s3066_s3 = sadd.s32 4294967294, %s1917_s29  }
 0x372   : > { %s1378_s20 = sand.u32 1, %s3066_s3  }
 0x373   : > { %s1379_s15 = scalar_lea.sflag [#allocation5], %s1378_s20 }
 0x374   : > { %1888 = dma.done.wait (!%p1608_p3), %s1379_s15, 2080  }
 0x375   : > { %1890 = vsyncadd (!%p1608_p3), %s1379_s15, 4294965216  ;;  %s1397_s11 = scalar_lea.sflag [#allocation8], %s1369_s22 }
 0x376   : > { %1892 = dma.done.wait (!%p1608_p3), %s1397_s11, 16  }
 0x377   : > { %1894 = vsyncadd (!%p1608_p3), %s1397_s11, 4294967280  ;;  %s27_s29 = sadd.s32 1, %s1917_s29   ;;  %s3067_s24 = smov %s1901_s25 }
 0x378   : > { %p24_p4 = scmp.ge.s32.totalorder %s27_s29, 4   ;;  %s3068_s25 = smov %s1905_s26 }
 0x379   : > { %s3069_s26 = smov %s2026_s14  ;;  %s3070_s27 = smov %s1913_s28 }
 0x37a   : > { %s3071_s28 = smov %s3073_s9  ;;  %26 = sbr.rel (!%p24_p4) target bundleno = 13 (0xd), region = 124 }
 0x381   :  { %1401 = vsyncpa [#allocation3], 1 }
 0x382   :  { %1403 = vsyncpa [#allocation3 + $0x1], 1 }
 0x383   :  { %1404 = vsyncpa [#allocation5], 1 }
 0x384   :  { %1406 = vsyncpa [#allocation5 + $0x1], 1 }
 0x385   :  { %1407 = vsyncpa [#allocation8], 1 }
 0x386   :  { %1409 = vsyncpa [#allocation8 + $0x1], 1 }

</bundles_post_ra>
